<compile_context>
chip_gen: v6e
topology: v6e:2x2x1
jax: 0.10.0
libtpu: 0.0.40
codegen_flags: <defaults>
</compile_context>

<pallas_src>
import functools

import jax
import jax.numpy as jnp
from jax.experimental import pallas as pl
from jax.experimental.pallas import tpu as pltpu

_VMEM_LIMIT = 64 * 1024 * 1024
_LN_EPS = 1e-5
_NEG_INF = -1e9


def _layernorm(res, g, beta):
    """LayerNorm over the last dim with f32 statistics; res is f32, g/beta broadcast."""
    mu = jnp.mean(res, axis=-1, keepdims=True)
    var = jnp.mean((res - mu) * (res - mu), axis=-1, keepdims=True)
    return (res - mu) * jax.lax.rsqrt(var + _LN_EPS) * g + beta


# ----------------------------- Pallas kernels -----------------------------

def _mha_addnorm_kernel(x_ref, kv_ref, mask_ref,
                        wq_ref, bq_ref, wkv_ref, bkv_ref,
                        wo_ref, bo_ref, g_ref, beta_ref,
                        o_ref,
                        k_scr, v_scr,
                        *, num_head, scale):
    """Fused MHA (all heads batched) + output projection + LayerNorm(x + attn).

    Grid = (batch, query-tile).  x_ref: (1, tq, D) query rows (also the residual);
    kv_ref: (1, Lk, D); mask_ref: (1, 1 or tq, Lk) 0/1 mask.
    """
    qi = pl.program_id(1)
    tq, D = x_ref.shape[1], x_ref.shape[2]
    Lk = kv_ref.shape[1]
    dk = D // num_head

    # K/V projection once per batch element (q-tile axis is innermost / "arbitrary"),
    # fused as a single (Lk, D) @ (D, 2D) matmul; stored head-major in VMEM scratch.
    @pl.when(qi == 0)
    def _():
        kv = kv_ref[0]                                                   # (Lk, D) bf16
        kvp = (jnp.dot(kv, wkv_ref[...], preferred_element_type=jnp.float32)
               + bkv_ref[...])                                           # (Lk, 2D) f32
        k = kvp[:, :D].astype(jnp.bfloat16)
        v = kvp[:, D:].astype(jnp.bfloat16)
        k_scr[...] = jnp.transpose(k.reshape(Lk, num_head, dk), (1, 0, 2))
        v_scr[...] = jnp.transpose(v.reshape(Lk, num_head, dk), (1, 0, 2))

    x = x_ref[0]                                                         # (tq, D) bf16
    # Q projection (1/sqrt(dk) folded into q so the score matmul needs no extra mul).
    q = (jnp.dot(x, wq_ref[...], preferred_element_type=jnp.float32)
         + bq_ref[...]) * scale                                          # (tq, D) f32
    qh = jnp.transpose(q.astype(jnp.bfloat16).reshape(tq, num_head, dk), (1, 0, 2))

    # Scores for all heads in one batched matmul: (H,tq,dk) x (H,Lk,dk) -> (H,tq,Lk).
    s = jax.lax.dot_general(qh, k_scr[...], (((2,), (2,)), ((0,), (0,))),
                            preferred_element_type=jnp.float32)

    # Additive mask bias generated in-kernel from the compact 0/1 mask.
    bias = jnp.where(mask_ref[0] != 0, 0.0, _NEG_INF).astype(jnp.float32)
    s = s + bias[None, :, :]
    s = s - jnp.max(s, axis=-1, keepdims=True)
    p = jnp.exp(s)
    p = p * pl.reciprocal(jnp.sum(p, axis=-1, keepdims=True), approx=True)

    # Context: (H,tq,Lk) x (H,Lk,dk) -> (H,tq,dk), then concatenate heads -> (tq, D).
    ctx = jax.lax.dot_general(p.astype(jnp.bfloat16), v_scr[...],
                              (((2,), (1,)), ((0,), (0,))),
                              preferred_element_type=jnp.float32)
    ctx = jnp.transpose(ctx, (1, 0, 2)).reshape(tq, D).astype(jnp.bfloat16)

    # Single output projection on the concatenated context.
    attn = jnp.dot(ctx, wo_ref[...], preferred_element_type=jnp.float32) + bo_ref[...]

    # Add & LayerNorm epilogue (eps = 1e-5, PyTorch default).
    res = x.astype(jnp.float32) + attn
    o_ref[0] = _layernorm(res, g_ref[...], beta_ref[...]).astype(o_ref.dtype)


def _ffn_addnorm_kernel(y_ref, w1_ref, b1_ref, w2_ref, b2_ref, g_ref, beta_ref,
                        o_ref, acc_ref):
    """Fused Linear->ReLU->Linear->LayerNorm(y+ffn); grid=(row tile, F tile)."""
    f = pl.program_id(1)

    @pl.when(f == 0)
    def _():
        acc_ref[...] = jnp.zeros_like(acc_ref)

    y = y_ref[...]                                                       # (tm, D) bf16
    h = jnp.dot(y, w1_ref[...], preferred_element_type=jnp.float32) + b1_ref[...]
    h = jnp.maximum(h, 0.0).astype(jnp.bfloat16)
    acc_ref[...] += jnp.dot(h, w2_ref[...], preferred_element_type=jnp.float32)

    @pl.when(f == pl.num_programs(1) - 1)
    def _():
        res = y.astype(jnp.float32) + acc_ref[...] + b2_ref[...]
        o_ref[...] = _layernorm(res, g_ref[...], beta_ref[...]).astype(o_ref.dtype)


def _linear_kernel(x_ref, w_ref, b_ref, o_ref):
    """out = x @ w + b on an (M-tile, N-tile) block; x block resident across N."""
    y = jnp.dot(x_ref[...], w_ref[...], preferred_element_type=jnp.float32) + b_ref[...]
    o_ref[...] = y.astype(o_ref.dtype)


# ----------------------------- kernel wrappers -----------------------------

def _tile(n, cap):
    return n if n <= cap else cap


def mha_addnorm(p, ln_g, ln_b, x, kv, mask, num_head):
    """Fused MHA(q=x, k=v=kv) + LayerNorm(x + attn).  Grid = (batch, query tiles)."""
    B, Lq, D = x.shape
    Lk = kv.shape[1]
    assert D % num_head == 0
    dk = D // num_head
    scale = 1.0 / float(dk) ** 0.5

    tq = _tile(Lq, 256)
    nq = pl.cdiv(Lq, tq)

    # mask is either (B, 1, Lk) (padding) or (B, Lq, Lk) (e.g. causal).
    mq = mask.shape[1]
    mq_blk = 1 if mq == 1 else tq
    mask_idx = (lambda b, qi: (b, 0, 0)) if mq == 1 else (lambda b, qi: (b, qi, 0))

    kernel = functools.partial(_mha_addnorm_kernel, num_head=num_head, scale=scale)
    rep = lambda b, qi: (0, 0)   # weights / params: same block every step (stay resident)

    return pl.pallas_call(
        kernel,
        out_shape=jax.ShapeDtypeStruct((B, Lq, D), jnp.bfloat16),
        grid=(B, nq),
        in_specs=[
            pl.BlockSpec((1, tq, D), lambda b, qi: (b, qi, 0)),
            pl.BlockSpec((1, Lk, D), lambda b, qi: (b, 0, 0)),
            pl.BlockSpec((1, mq_blk, Lk), mask_idx),
            pl.BlockSpec((D, D), rep), pl.BlockSpec((1, D), rep),
            pl.BlockSpec((D, 2 * D), rep), pl.BlockSpec((1, 2 * D), rep),
            pl.BlockSpec((D, D), rep), pl.BlockSpec((1, D), rep),
            pl.BlockSpec((1, D), rep), pl.BlockSpec((1, D), rep),
        ],
        out_specs=pl.BlockSpec((1, tq, D), lambda b, qi: (b, qi, 0)),
        scratch_shapes=[
            pltpu.VMEM((num_head, Lk, dk), jnp.bfloat16),
            pltpu.VMEM((num_head, Lk, dk), jnp.bfloat16),
        ],
        compiler_params=pltpu.CompilerParams(
            dimension_semantics=("parallel", "arbitrary"),
            vmem_limit_bytes=_VMEM_LIMIT),
    )(x, kv, mask,
      p["wq"], p["bq"].reshape(1, D), p["wkv"], p["bkv"].reshape(1, 2 * D),
      p["wo"], p["bo"].reshape(1, D),
      ln_g.reshape(1, D), ln_b.reshape(1, D))


def ffn_addnorm(p, ln_g, ln_b, x):
    """Fused FFN + LayerNorm(x + ffn); rows tiled ("parallel"), F tiled ("arbitrary")."""
    B, L, D = x.shape
    M = B * L
    F = p["w1"].shape[1]
    tm = _tile(M, 256)
    tf = _tile(F, 512)
    assert F % tf == 0, "d_ff must be a multiple of the F tile"

    out = pl.pallas_call(
        _ffn_addnorm_kernel,
        out_shape=jax.ShapeDtypeStruct((M, D), jnp.bfloat16),
        grid=(pl.cdiv(M, tm), F // tf),
        in_specs=[
            pl.BlockSpec((tm, D), lambda i, f: (i, 0)),
            pl.BlockSpec((D, tf), lambda i, f: (0, f)),
            pl.BlockSpec((1, tf), lambda i, f: (0, f)),
            pl.BlockSpec((tf, D), lambda i, f: (f, 0)),
            pl.BlockSpec((1, D), lambda i, f: (0, 0)),
            pl.BlockSpec((1, D), lambda i, f: (0, 0)),
            pl.BlockSpec((1, D), lambda i, f: (0, 0)),
        ],
        out_specs=pl.BlockSpec((tm, D), lambda i, f: (i, 0)),
        scratch_shapes=[pltpu.VMEM((tm, D), jnp.float32)],
        compiler_params=pltpu.CompilerParams(
            dimension_semantics=("parallel", "arbitrary"),
            vmem_limit_bytes=_VMEM_LIMIT),
    )(x.reshape(M, D), p["w1"], p["b1"].reshape(1, F),
      p["w2"], p["b2"].reshape(1, D), ln_g.reshape(1, D), ln_b.reshape(1, D))
    return out.reshape(B, L, D)


def linear_tiled(x2d, w, b, out_dtype=jnp.float32):
    """(M, K) @ (K, N) + b tiled over M and N (K = d_model, kept whole)."""
    M, K = x2d.shape
    N = w.shape[1]
    tm = _tile(M, 256)
    tn = _tile(N, 512)
    return pl.pallas_call(
        _linear_kernel,
        out_shape=jax.ShapeDtypeStruct((M, N), out_dtype),
        grid=(pl.cdiv(M, tm), pl.cdiv(N, tn)),
        in_specs=[
            pl.BlockSpec((tm, K), lambda i, j: (i, 0)),
            pl.BlockSpec((K, tn), lambda i, j: (0, j)),
            pl.BlockSpec((1, tn), lambda i, j: (0, j)),
        ],
        out_specs=pl.BlockSpec((tm, tn), lambda i, j: (i, j)),
        compiler_params=pltpu.CompilerParams(
            dimension_semantics=("parallel", "parallel"),
            vmem_limit_bytes=_VMEM_LIMIT),
    )(x2d, w, b.reshape(1, N))


# ----------------------------- model glue (plain JAX) -----------------------------

def encoder_block(p, x, self_mask, num_head):
    y = mha_addnorm(p["attn"], p["ln1_g"], p["ln1_b"], x, x, self_mask, num_head)
    z = ffn_addnorm(p["ffn"], p["ln2_g"], p["ln2_b"], y)
    return z


def decoder_block(p, x, enc_out, self_mask, cross_mask, num_head):
    x2 = mha_addnorm(p["attn1"], p["ln1_g"], p["ln1_b"], x, x, self_mask, num_head)
    x4 = mha_addnorm(p["attn2"], p["ln2_g"], p["ln2_b"], x2, enc_out, cross_mask, num_head)
    # Original PyTorch code reuses addnorm2 here (addnorm3 is defined but unused).
    x6 = ffn_addnorm(p["ffn"], p["ln2_g"], p["ln2_b"], x4)
    return x6


def transformer_forward(params, inputs, outputs, inputs_mask, outputs_mask, num_head):
    Ls = inputs.shape[1]
    Lt = outputs.shape[1]
    inputs_mask = inputs_mask.astype(jnp.float32)
    outputs_mask = outputs_mask.astype(jnp.float32)

    # --- encoder ---
    # TODO(synk): embedding gather + PE add left to XLA (data-dependent gather; trivially mem-bound).
    x = params["src_embed"][inputs].astype(jnp.float32) + params["pe"][:Ls][None]
    x = x.astype(jnp.bfloat16)
    for p in params["enc_blocks"]:
        x = encoder_block(p, x, inputs_mask, num_head)
    enc_out = x

    # --- decoder ---
    y = params["trg_embed"][outputs].astype(jnp.float32) + params["pe"][:Lt][None]
    y = y.astype(jnp.bfloat16)
    for p in params["dec_blocks"]:
        y = decoder_block(p, y, enc_out, outputs_mask, inputs_mask, num_head)

    # --- output projection (tiled over rows and vocab) ---
    B_, Lt_, D = y.shape
    logits = linear_tiled(y.reshape(B_ * Lt_, D), params["w_out"], params["b_out"])
    return logits.reshape(B_, Lt_, -1)


# ----------------------------- deterministic init -----------------------------

def positional_encoding(max_len, d_model):
    pos = jnp.arange(max_len, dtype=jnp.float32)[:, None]
    i = jnp.arange(0, d_model, 2, dtype=jnp.float32)
    div = jnp.exp(-jnp.log(10000.0) * i / d_model)
    pe = jnp.zeros((max_len, d_model), jnp.float32)
    pe = pe.at[:, 0::2].set(jnp.sin(pos * div))
    pe = pe.at[:, 1::2].set(jnp.cos(pos * div))
    return pe


def init_params(key, src_vocab, trg_vocab, d_model, num_head, num_enc, num_dec, d_ff, max_len):
    keys = iter(jax.random.split(key, 256))

    def dense(din, dout):
        w = (jax.random.normal(next(keys), (din, dout), jnp.float32) * 0.02).astype(jnp.bfloat16)
        b = jnp.zeros((dout,), jnp.bfloat16)
        return w, b

    def mha_params():
        wq, bq = dense(d_model, d_model)
        wk, bk = dense(d_model, d_model)
        wv, bv = dense(d_model, d_model)
        wo, bo = dense(d_model, d_model)
        # K/V weights concatenated so the kernel does one (D, 2D) projection.
        return dict(wq=wq, bq=bq,
                    wkv=jnp.concatenate([wk, wv], axis=1),
                    bkv=jnp.concatenate([bk, bv], axis=0),
                    wo=wo, bo=bo)

    def ffn_params():
        w1, b1 = dense(d_model, d_ff)
        w2, b2 = dense(d_ff, d_model)
        return dict(w1=w1, b1=b1, w2=w2, b2=b2)

    ones = jnp.ones((d_model,), jnp.bfloat16)
    zeros = jnp.zeros((d_model,), jnp.bfloat16)

    enc_blocks = [
        dict(attn=mha_params(), ln1_g=ones, ln1_b=zeros,
             ffn=ffn_params(), ln2_g=ones, ln2_b=zeros)
        for _ in range(num_enc)
    ]
    dec_blocks = [
        dict(attn1=mha_params(), ln1_g=ones, ln1_b=zeros,
             attn2=mha_params(), ln2_g=ones, ln2_b=zeros,
             ffn=ffn_params())
        for _ in range(num_dec)
    ]
    w_out, b_out = dense(d_model, trg_vocab)
    return dict(
        src_embed=(jax.random.normal(next(keys), (src_vocab, d_model), jnp.float32)
                   * 0.02).astype(jnp.bfloat16),
        trg_embed=(jax.random.normal(next(keys), (trg_vocab, d_model), jnp.float32)
                   * 0.02).astype(jnp.bfloat16),
        pe=positional_encoding(max_len, d_model),
        enc_blocks=enc_blocks,
        dec_blocks=dec_blocks,
        w_out=w_out,
        b_out=b_out,
    )


# ----------------------------- driver -----------------------------

if __name__ == "__main__":
    B, Ls, Lt = 2, 8, 8
    d_model, num_head = 32, 4          # NOTE: real models should use lane-dense (128x) dims
    num_enc, num_dec = 2, 2
    d_ff = 64
    src_vocab, trg_vocab = 16, 16
    max_len = 64

    root = jax.random.PRNGKey(0)
    k_params, k_in, k_out = jax.random.split(root, 3)

    params = init_params(k_params, src_vocab, trg_vocab, d_model, num_head,
                         num_enc, num_dec, d_ff, max_len)

    inputs = jax.random.randint(k_in, (B, Ls), 0, src_vocab, dtype=jnp.int32)
    outputs = jax.random.randint(k_out, (B, Lt), 0, trg_vocab, dtype=jnp.int32)
    # encoder / cross-attention mask: (B, 1, Ls), 1 = keep (no padding in this example)
    inputs_mask = jnp.ones((B, 1, Ls), jnp.float32)
    # decoder self-attention mask: (B, Lt, Lt) causal
    outputs_mask = jnp.broadcast_to(
        jnp.tril(jnp.ones((Lt, Lt), jnp.float32))[None], (B, Lt, Lt))

    logits = transformer_forward(params, inputs, outputs,
                                 inputs_mask, outputs_mask, num_head)
    jax.block_until_ready(logits)
    assert logits.shape == (B, Lt, trg_vocab)
    print("KERNEL_OK")
</pallas_src>

<mosaic_0001>
module attributes {stable_mosaic.version = 11 : i64} {
  func.func @_mha_addnorm_kernel(%arg0: i32, %arg1: i32, %arg2: memref<1x8x32xbf16, #tpu.memory_space<vmem>>, %arg3: memref<1x8x32xbf16, #tpu.memory_space<vmem>>, %arg4: memref<1x1x8xf32, #tpu.memory_space<vmem>>, %arg5: memref<32x32xbf16, #tpu.memory_space<vmem>>, %arg6: memref<1x32xbf16, #tpu.memory_space<vmem>>, %arg7: memref<32x64xbf16, #tpu.memory_space<vmem>>, %arg8: memref<1x64xbf16, #tpu.memory_space<vmem>>, %arg9: memref<32x32xbf16, #tpu.memory_space<vmem>>, %arg10: memref<1x32xbf16, #tpu.memory_space<vmem>>, %arg11: memref<1x32xbf16, #tpu.memory_space<vmem>>, %arg12: memref<1x32xbf16, #tpu.memory_space<vmem>>, %arg13: memref<1x8x32xbf16, #tpu.memory_space<vmem>>, %arg14: memref<4x8x8xbf16, #tpu.memory_space<vmem>>, %arg15: memref<4x8x8xbf16, #tpu.memory_space<vmem>>) attributes {dimension_semantics = [#tpu.dimension_semantics<parallel>, #tpu.dimension_semantics<arbitrary>], iteration_bounds = array<i64: 2, 1>, scalar_prefetch = 0 : i64, scratch_operands = 2 : i64, tpu.core_type = #tpu.core_type<tc>, window_params = [{transform_indices = @transform_0, window_bounds = array<i64: 1, 8, 32>}, {transform_indices = @transform_1, window_bounds = array<i64: 1, 8, 32>}, {transform_indices = @transform_2, window_bounds = array<i64: 1, 1, 8>}, {pipeline_mode = #tpu.pipeline_mode<synchronous>, transform_indices = @transform_3, window_bounds = array<i64: 32, 32>}, {pipeline_mode = #tpu.pipeline_mode<synchronous>, transform_indices = @transform_4, window_bounds = array<i64: 1, 32>}, {pipeline_mode = #tpu.pipeline_mode<synchronous>, transform_indices = @transform_5, window_bounds = array<i64: 32, 64>}, {pipeline_mode = #tpu.pipeline_mode<synchronous>, transform_indices = @transform_6, window_bounds = array<i64: 1, 64>}, {pipeline_mode = #tpu.pipeline_mode<synchronous>, transform_indices = @transform_7, window_bounds = array<i64: 32, 32>}, {pipeline_mode = #tpu.pipeline_mode<synchronous>, transform_indices = @transform_8, window_bounds = array<i64: 1, 32>}, {pipeline_mode = #tpu.pipeline_mode<synchronous>, transform_indices = @transform_9, window_bounds = array<i64: 1, 32>}, {pipeline_mode = #tpu.pipeline_mode<synchronous>, transform_indices = @transform_10, window_bounds = array<i64: 1, 32>}, {transform_indices = @transform_11, window_bounds = array<i64: 1, 8, 32>}]} {
    %c0_i32 = arith.constant 0 : i32
    %0 = arith.cmpi eq, %arg1, %c0_i32 : i32
    %1 = arith.extui %0 : i1 to i32
    %c0_i32_0 = arith.constant 0 : i32
    %2 = arith.cmpi ne, %1, %c0_i32_0 : i32
    scf.if %2 {
      %c0_41 = arith.constant 0 : index
      %c0_42 = arith.constant 0 : index
      %c0_43 = arith.constant 0 : index
      %84 = vector.load %arg3[%c0_41, %c0_42, %c0_43] : memref<1x8x32xbf16, #tpu.memory_space<vmem>>, vector<1x8x32xbf16>
      %85 = vector.shape_cast %84 : vector<1x8x32xbf16> to vector<8x32xbf16>
      %c0_44 = arith.constant 0 : index
      %c0_45 = arith.constant 0 : index
      %86 = vector.load %arg7[%c0_44, %c0_45] : memref<32x64xbf16, #tpu.memory_space<vmem>>, vector<32x64xbf16>
      %cst_46 = arith.constant dense<0.000000e+00> : vector<8x64xf32>
      %87 = tpu.matmul %85, %86, %cst_46 {dimension_numbers = #tpu.dot_dimension_numbers<[1], [0], [0], [1], [0, 0, 1, 1], [], []>} : vector<8x32xbf16>, vector<32x64xbf16>, vector<8x64xf32> -> vector<8x64xf32>
      %c0_47 = arith.constant 0 : index
      %c0_48 = arith.constant 0 : index
      %88 = vector.load %arg8[%c0_47, %c0_48] : memref<1x64xbf16, #tpu.memory_space<vmem>>, vector<1x64xbf16>
      %89 = arith.extf %88 : vector<1x64xbf16> to vector<1x64xf32>
      %90 = vector.broadcast %89 : vector<1x64xf32> to vector<8x64xf32>
      %91 = arith.addf %87, %90 : vector<8x64xf32>
      %92 = vector.extract_strided_slice %91 {offsets = [0, 0], sizes = [8, 32], strides = [1, 1]} : vector<8x64xf32> to vector<8x32xf32>
      %93 = arith.truncf %92 : vector<8x32xf32> to vector<8x32xbf16>
      %94 = vector.extract_strided_slice %91 {offsets = [0, 32], sizes = [8, 32], strides = [1, 1]} : vector<8x64xf32> to vector<8x32xf32>
      %95 = arith.truncf %94 : vector<8x32xf32> to vector<8x32xbf16>
      %96 = vector.shape_cast %93 : vector<8x32xbf16> to vector<8x4x8xbf16>
      %97 = tpu.transpose %96, [1, 0, 2] : vector<8x4x8xbf16> -> vector<4x8x8xbf16>
      %c0_49 = arith.constant 0 : index
      %c0_50 = arith.constant 0 : index
      %c0_51 = arith.constant 0 : index
      %98 = vector.load %arg14[%c0_49, %c0_50, %c0_51] : memref<4x8x8xbf16, #tpu.memory_space<vmem>>, vector<4x8x8xbf16>
      tpu.vector_store %arg14[%c0_49, %c0_50, %c0_51], %97 {strides = array<i32>} : memref<4x8x8xbf16, #tpu.memory_space<vmem>>, vector<4x8x8xbf16>,
      %99 = vector.shape_cast %95 : vector<8x32xbf16> to vector<8x4x8xbf16>
      %100 = tpu.transpose %99, [1, 0, 2] : vector<8x4x8xbf16> -> vector<4x8x8xbf16>
      %c0_52 = arith.constant 0 : index
      %c0_53 = arith.constant 0 : index
      %c0_54 = arith.constant 0 : index
      %101 = vector.load %arg15[%c0_52, %c0_53, %c0_54] : memref<4x8x8xbf16, #tpu.memory_space<vmem>>, vector<4x8x8xbf16>
      tpu.vector_store %arg15[%c0_52, %c0_53, %c0_54], %100 {strides = array<i32>} : memref<4x8x8xbf16, #tpu.memory_space<vmem>>, vector<4x8x8xbf16>,
    } else {
    }
    %c0 = arith.constant 0 : index
    %c0_1 = arith.constant 0 : index
    %c0_2 = arith.constant 0 : index
    %3 = vector.load %arg2[%c0, %c0_1, %c0_2] : memref<1x8x32xbf16, #tpu.memory_space<vmem>>, vector<1x8x32xbf16>
    %4 = vector.shape_cast %3 : vector<1x8x32xbf16> to vector<8x32xbf16>
    %c0_3 = arith.constant 0 : index
    %c0_4 = arith.constant 0 : index
    %5 = vector.load %arg5[%c0_3, %c0_4] : memref<32x32xbf16, #tpu.memory_space<vmem>>, vector<32x32xbf16>
    %cst = arith.constant dense<0.000000e+00> : vector<8x32xf32>
    %6 = tpu.matmul %4, %5, %cst {dimension_numbers = #tpu.dot_dimension_numbers<[1], [0], [0], [1], [0, 0, 1, 1], [], []>} : vector<8x32xbf16>, vector<32x32xbf16>, vector<8x32xf32> -> vector<8x32xf32>
    %c0_5 = arith.constant 0 : index
    %c0_6 = arith.constant 0 : index
    %7 = vector.load %arg6[%c0_5, %c0_6] : memref<1x32xbf16, #tpu.memory_space<vmem>>, vector<1x32xbf16>
    %8 = arith.extf %7 : vector<1x32xbf16> to vector<1x32xf32>
    %9 = vector.broadcast %8 : vector<1x32xf32> to vector<8x32xf32>
    %10 = arith.addf %6, %9 : vector<8x32xf32>
    %cst_7 = arith.constant 0.353553385 : f32
    %11 = vector.broadcast %cst_7 : f32 to vector<8x32xf32>
    %12 = arith.mulf %10, %11 : vector<8x32xf32>
    %13 = arith.truncf %12 : vector<8x32xf32> to vector<8x32xbf16>
    %14 = vector.shape_cast %13 : vector<8x32xbf16> to vector<8x4x8xbf16>
    %15 = tpu.transpose %14, [1, 0, 2] : vector<8x4x8xbf16> -> vector<4x8x8xbf16>
    %c0_8 = arith.constant 0 : index
    %c0_9 = arith.constant 0 : index
    %c0_10 = arith.constant 0 : index
    %16 = vector.load %arg14[%c0_8, %c0_9, %c0_10] : memref<4x8x8xbf16, #tpu.memory_space<vmem>>, vector<4x8x8xbf16>
    %cst_11 = arith.constant dense<0.000000e+00> : vector<4x8x8xf32>
    %17 = tpu.matmul %15, %16, %cst_11 {dimension_numbers = #tpu.dot_dimension_numbers<[2], [2], [1], [1], [0, 0, 0, 1, 1, 1], [0], [0]>} : vector<4x8x8xbf16>, vector<4x8x8xbf16>, vector<4x8x8xf32> -> vector<4x8x8xf32>
    %c0_12 = arith.constant 0 : index
    %c0_13 = arith.constant 0 : index
    %c0_14 = arith.constant 0 : index
    %18 = vector.load %arg4[%c0_12, %c0_13, %c0_14] : memref<1x1x8xf32, #tpu.memory_space<vmem>>, vector<1x1x8xf32>
    %19 = vector.shape_cast %18 : vector<1x1x8xf32> to vector<1x8xf32>
    %cst_15 = arith.constant 0.000000e+00 : f32
    %20 = vector.broadcast %cst_15 : f32 to vector<1x8xf32>
    %21 = arith.cmpf one, %19, %20 : vector<1x8xf32>
    %cst_16 = arith.constant 0.000000e+00 : f32
    %cst_17 = arith.constant -1.000000e+09 : f32
    %22 = vector.broadcast %cst_16 : f32 to vector<1x8xf32>
    %23 = vector.broadcast %cst_17 : f32 to vector<1x8xf32>
    %24 = arith.select %21, %22, %23 : vector<1x8xi1>, vector<1x8xf32>
    %25 = vector.shape_cast %24 : vector<1x8xf32> to vector<1x1x8xf32>
    %26 = vector.broadcast %25 : vector<1x1x8xf32> to vector<4x8x8xf32>
    %27 = arith.addf %17, %26 : vector<4x8x8xf32>
    %cst_18 = arith.constant dense<0xFF800000> : vector<4x8xf32>
    %28 = vector.multi_reduction <maximumf>, %27, %cst_18 [2] : vector<4x8x8xf32> to vector<4x8xf32>
    %29 = vector.shape_cast %28 : vector<4x8xf32> to vector<4x8x1xf32>
    %30 = vector.broadcast %29 : vector<4x8x1xf32> to vector<4x8x8xf32>
    %31 = arith.subf %27, %30 : vector<4x8x8xf32>
    %32 = math.exp %31 : vector<4x8x8xf32>
    %cst_19 = arith.constant dense<0.000000e+00> : vector<4x8xf32>
    %33 = vector.multi_reduction <add>, %32, %cst_19 [2] : vector<4x8x8xf32> to vector<4x8xf32>
    %34 = vector.shape_cast %33 : vector<4x8xf32> to vector<4x8x1xf32>
    %35 = tpu.reciprocal %34 {approx = true} : vector<4x8x1xf32> -> vector<4x8x1xf32>
    %36 = vector.broadcast %35 : vector<4x8x1xf32> to vector<4x8x8xf32>
    %37 = arith.mulf %32, %36 : vector<4x8x8xf32>
    %38 = arith.truncf %37 : vector<4x8x8xf32> to vector<4x8x8xbf16>
    %c0_20 = arith.constant 0 : index
    %c0_21 = arith.constant 0 : index
    %c0_22 = arith.constant 0 : index
    %39 = vector.load %arg15[%c0_20, %c0_21, %c0_22] : memref<4x8x8xbf16, #tpu.memory_space<vmem>>, vector<4x8x8xbf16>
    %cst_23 = arith.constant dense<0.000000e+00> : vector<4x8x8xf32>
    %40 = tpu.matmul %38, %39, %cst_23 {dimension_numbers = #tpu.dot_dimension_numbers<[2], [1], [1], [2], [0, 0, 0, 1, 1, 2], [0], [0]>} : vector<4x8x8xbf16>, vector<4x8x8xbf16>, vector<4x8x8xf32> -> vector<4x8x8xf32>
    %41 = tpu.transpose %40, [1, 0, 2] : vector<4x8x8xf32> -> vector<8x4x8xf32>
    %42 = vector.shape_cast %41 : vector<8x4x8xf32> to vector<8x32xf32>
    %43 = arith.truncf %42 : vector<8x32xf32> to vector<8x32xbf16>
    %c0_24 = arith.constant 0 : index
    %c0_25 = arith.constant 0 : index
    %44 = vector.load %arg9[%c0_24, %c0_25] : memref<32x32xbf16, #tpu.memory_space<vmem>>, vector<32x32xbf16>
    %cst_26 = arith.constant dense<0.000000e+00> : vector<8x32xf32>
    %45 = tpu.matmul %43, %44, %cst_26 {dimension_numbers = #tpu.dot_dimension_numbers<[1], [0], [0], [1], [0, 0, 1, 1], [], []>} : vector<8x32xbf16>, vector<32x32xbf16>, vector<8x32xf32> -> vector<8x32xf32>
    %c0_27 = arith.constant 0 : index
    %c0_28 = arith.constant 0 : index
    %46 = vector.load %arg10[%c0_27, %c0_28] : memref<1x32xbf16, #tpu.memory_space<vmem>>, vector<1x32xbf16>
    %47 = arith.extf %46 : vector<1x32xbf16> to vector<1x32xf32>
    %48 = vector.broadcast %47 : vector<1x32xf32> to vector<8x32xf32>
    %49 = arith.addf %45, %48 : vector<8x32xf32>
    %50 = arith.extf %4 : vector<8x32xbf16> to vector<8x32xf32>
    %51 = arith.addf %50, %49 : vector<8x32xf32>
    %c0_29 = arith.constant 0 : index
    %c0_30 = arith.constant 0 : index
    %52 = vector.load %arg11[%c0_29, %c0_30] : memref<1x32xbf16, #tpu.memory_space<vmem>>, vector<1x32xbf16>
    %c0_31 = arith.constant 0 : index
    %c0_32 = arith.constant 0 : index
    %53 = vector.load %arg12[%c0_31, %c0_32] : memref<1x32xbf16, #tpu.memory_space<vmem>>, vector<1x32xbf16>
    %cst_33 = arith.constant dense<0.000000e+00> : vector<8xf32>
    %54 = vector.multi_reduction <add>, %51, %cst_33 [1] : vector<8x32xf32> to vector<8xf32>
    %55 = vector.shape_cast %54 : vector<8xf32> to vector<8x1xf32>
    %cst_34 = arith.constant 3.200000e+01 : f32
    %56 = vector.broadcast %cst_34 : f32 to vector<8x1xf32>
    %57 = arith.divf %55, %56 : vector<8x1xf32>
    %58 = vector.broadcast %57 : vector<8x1xf32> to vector<8x32xf32>
    %59 = arith.subf %51, %58 : vector<8x32xf32>
    %60 = vector.broadcast %57 : vector<8x1xf32> to vector<8x32xf32>
    %61 = arith.subf %51, %60 : vector<8x32xf32>
    %62 = arith.mulf %59, %61 : vector<8x32xf32>
    %cst_35 = arith.constant dense<0.000000e+00> : vector<8xf32>
    %63 = vector.multi_reduction <add>, %62, %cst_35 [1] : vector<8x32xf32> to vector<8xf32>
    %64 = vector.shape_cast %63 : vector<8xf32> to vector<8x1xf32>
    %cst_36 = arith.constant 3.200000e+01 : f32
    %65 = vector.broadcast %cst_36 : f32 to vector<8x1xf32>
    %66 = arith.divf %64, %65 : vector<8x1xf32>
    %67 = vector.broadcast %57 : vector<8x1xf32> to vector<8x32xf32>
    %68 = arith.subf %51, %67 : vector<8x32xf32>
    %cst_37 = arith.constant 9.99999974E-6 : f32
    %69 = vector.broadcast %cst_37 : f32 to vector<8x1xf32>
    %70 = arith.addf %66, %69 : vector<8x1xf32>
    %71 = math.rsqrt %70 : vector<8x1xf32>
    %72 = vector.broadcast %71 : vector<8x1xf32> to vector<8x32xf32>
    %73 = arith.mulf %68, %72 : vector<8x32xf32>
    %74 = arith.extf %52 : vector<1x32xbf16> to vector<1x32xf32>
    %75 = vector.broadcast %74 : vector<1x32xf32> to vector<8x32xf32>
    %76 = arith.mulf %73, %75 : vector<8x32xf32>
    %77 = arith.extf %53 : vector<1x32xbf16> to vector<1x32xf32>
    %78 = vector.broadcast %77 : vector<1x32xf32> to vector<8x32xf32>
    %79 = arith.addf %76, %78 : vector<8x32xf32>
    %80 = arith.truncf %79 : vector<8x32xf32> to vector<8x32xbf16>
    %c0_38 = arith.constant 0 : index
    %c0_39 = arith.constant 0 : index
    %c0_40 = arith.constant 0 : index
    %81 = vector.load %arg13[%c0_38, %c0_39, %c0_40] : memref<1x8x32xbf16, #tpu.memory_space<vmem>>, vector<1x8x32xbf16>
    %82 = vector.shape_cast %81 : vector<1x8x32xbf16> to vector<8x32xbf16>
    %83 = vector.shape_cast %80 : vector<8x32xbf16> to vector<1x8x32xbf16>
    tpu.vector_store %arg13[%c0_38, %c0_39, %c0_40], %83 {strides = array<i32>} : memref<1x8x32xbf16, #tpu.memory_space<vmem>>, vector<1x8x32xbf16>,
    return
  }
  func.func @transform_0(%arg0: i32, %arg1: i32) -> (i32, i32, i32) {
    %c0_i32 = arith.constant 0 : i32
    %c0_i32_0 = arith.constant 0 : i32
    return %arg0, %arg1, %c0_i32 : i32, i32, i32
  }
  func.func @transform_1(%arg0: i32, %arg1: i32) -> (i32, i32, i32) {
    %c0_i32 = arith.constant 0 : i32
    %c0_i32_0 = arith.constant 0 : i32
    %c0_i32_1 = arith.constant 0 : i32
    return %arg0, %c0_i32, %c0_i32_0 : i32, i32, i32
  }
  func.func @transform_2(%arg0: i32, %arg1: i32) -> (i32, i32, i32) {
    %c0_i32 = arith.constant 0 : i32
    %c0_i32_0 = arith.constant 0 : i32
    %c0_i32_1 = arith.constant 0 : i32
    return %arg0, %c0_i32, %c0_i32_0 : i32, i32, i32
  }
  func.func @transform_3(%arg0: i32, %arg1: i32) -> (i32, i32) {
    %c0_i32 = arith.constant 0 : i32
    %c0_i32_0 = arith.constant 0 : i32
    %c0_i32_1 = arith.constant 0 : i32
    return %c0_i32, %c0_i32_0 : i32, i32
  }
  func.func @transform_4(%arg0: i32, %arg1: i32) -> (i32, i32) {
    %c0_i32 = arith.constant 0 : i32
    %c0_i32_0 = arith.constant 0 : i32
    %c0_i32_1 = arith.constant 0 : i32
    return %c0_i32, %c0_i32_0 : i32, i32
  }
  func.func @transform_5(%arg0: i32, %arg1: i32) -> (i32, i32) {
    %c0_i32 = arith.constant 0 : i32
    %c0_i32_0 = arith.constant 0 : i32
    %c0_i32_1 = arith.constant 0 : i32
    return %c0_i32, %c0_i32_0 : i32, i32
  }
  func.func @transform_6(%arg0: i32, %arg1: i32) -> (i32, i32) {
    %c0_i32 = arith.constant 0 : i32
    %c0_i32_0 = arith.constant 0 : i32
    %c0_i32_1 = arith.constant 0 : i32
    return %c0_i32, %c0_i32_0 : i32, i32
  }
  func.func @transform_7(%arg0: i32, %arg1: i32) -> (i32, i32) {
    %c0_i32 = arith.constant 0 : i32
    %c0_i32_0 = arith.constant 0 : i32
    %c0_i32_1 = arith.constant 0 : i32
    return %c0_i32, %c0_i32_0 : i32, i32
  }
  func.func @transform_8(%arg0: i32, %arg1: i32) -> (i32, i32) {
    %c0_i32 = arith.constant 0 : i32
    %c0_i32_0 = arith.constant 0 : i32
    %c0_i32_1 = arith.constant 0 : i32
    return %c0_i32, %c0_i32_0 : i32, i32
  }
  func.func @transform_9(%arg0: i32, %arg1: i32) -> (i32, i32) {
    %c0_i32 = arith.constant 0 : i32
    %c0_i32_0 = arith.constant 0 : i32
    %c0_i32_1 = arith.constant 0 : i32
    return %c0_i32, %c0_i32_0 : i32, i32
  }
  func.func @transform_10(%arg0: i32, %arg1: i32) -> (i32, i32) {
    %c0_i32 = arith.constant 0 : i32
    %c0_i32_0 = arith.constant 0 : i32
    %c0_i32_1 = arith.constant 0 : i32
    return %c0_i32, %c0_i32_0 : i32, i32
  }
  func.func @transform_11(%arg0: i32, %arg1: i32) -> (i32, i32, i32) {
    %c0_i32 = arith.constant 0 : i32
    %c0_i32_0 = arith.constant 0 : i32
    return %arg0, %arg1, %c0_i32 : i32, i32, i32
  }
}

</mosaic_0001>

<bundles_post_ra>
// kernel: tpu_custom_call.1
= control target key start
LH: loop header
LB: loop body
LE: loop exit
PB: predicated region body
PF: predicated region fallthrough
CT: control target
= control target key end

     0   :  { %s3032_s0 = inlined_call_operand.hbm [shape: bf16[2,8,32], index: 0, kind: input, shape index: {}]   ;;  %s3033_s1 = inlined_call_operand.hbm [shape: bf16[2,8,32], index: 1, kind: input, shape index: {}]   ;;  %s3034_s2 = inlined_call_operand.vmem [shape: f32[2,1,8], index: 2, kind: input, shape index: {}]   ;;  %s3035_s3 = inlined_call_operand.hbm [shape: bf16[32,32], index: 3, kind: input, shape index: {}]   ;;  %s3036_s4 = inlined_call_operand.vmem [shape: bf16[1,32], index: 4, kind: input, shape index: {}]   ;;  %s3037_s5 = inlined_call_operand.hbm [shape: bf16[32,64], index: 5, kind: input, shape index: {}]   ;;  %s3038_s6 = inlined_call_operand.vmem [shape: bf16[1,64], index: 6, kind: input, shape index: {}]   ;;  %s3039_s7 = inlined_call_operand.hbm [shape: bf16[32,32], index: 7, kind: input, shape index: {}]   ;;  %s3040_s8 = inlined_call_operand.vmem [shape: bf16[1,32], index: 8, kind: input, shape index: {}]   ;;  %s3041_s9 = inlined_call_operand.vmem [shape: bf16[1,32], index: 9, kind: input, shape index: {}]   ;;  %s3042_s10 = inlined_call_operand.vmem [shape: bf16[1,32], index: 10, kind: input, shape index: {}]   ;;  %s3043_s11 = inlined_call_operand.hbm [shape: bf16[2,8,32], index: 11, kind: output, shape index: {}]  }
   0x1   :  { %3052 = sst [smem:[#allocation23_spill]] %s3032_s0 }
   0x2   :  { %3053 = sst [smem:[#allocation24_spill]] %s3035_s3 }
   0x3   :  { %3054 = sst [smem:[#allocation25_spill]] %s3037_s5 }
   0x4   :  { %3055 = sst [smem:[#allocation26_spill]] %s3039_s7 }
   0x5   :  { %3056 = sst [smem:[#allocation27_spill]] %s3043_s11 }
   0x6   :  { %16 = vsyncpa [#allocation5], 0 }
   0x7   :  { %18 = vsyncpa [#allocation5 + $0x1], 0 }
   0x8   :  { %19 = vsyncpa [#allocation8], 0 }
   0x9   :  { %21 = vsyncpa [#allocation8 + $0x1], 0 }
   0xa   :  { %22 = vsyncpa [#allocation11], 0 }
   0xb   :  { %23 = vsyncpa [#allocation6], 0 }
   0xc   :  { %25 = vsyncpa [#allocation6 + $0x1], 0  ;;  %s2604_s17 = smov 0   ;;  %s2606_s18 = smov 0  }
   0xd   :  { %s2608_s19 = smov 0   ;;  %s2610_s20 = smov 0  }
   0xe   :  { %s2612_s21 = smov 0   ;;  %s2614_s22 = smov 0  }
   0xf LB: > { %3057 = sst [smem:[#allocation19_spill]] %s2501_s17  ;;  %s2635_s23 = sadd.s32 4294967295, %s2521_s22   ;;  %s2521_s22 = sphi %s2614_s22, %s31_s22   ;;  %s2517_s21 = sphi %s2612_s21, %s3088_s21   ;;  %s2513_s20 = sphi %s2610_s20, %s3087_s20   ;;  %s2509_s19 = sphi %s2608_s19, %s3086_s19   ;;  %s2505_s18 = sphi %s2606_s18, %s3085_s18   ;;  %s2501_s17 = sphi %s2604_s17, %s3084_s17  }
  0x10   : > { %s2021_s24 = sadd.s32 4294967294, %s2521_s22   ;;  %p65_p0 = scmp.ne.s32.totalorder %s2505_s18, %s2501_s17 }
  0x11   : > { %p3045_p1 = scmp.eq.s32.totalorder %s2635_s23, 0  ;;  %p317_p3 = scmp.eq.s32.totalorder %s2021_s24, 1 }
  0x12   : > { %p2022_p5 = scmp.ge.s32.totalorder %s2521_s22, 1  ;;  %p324_p7 = scmp.lt.s32.totalorder %s2521_s22, 3 }
  0x13   : > { %p2644_p4 = por %p3045_p1, %p65_p0  ;;  %p2649_p6 = por %p317_p3, %p65_p0 }
  0x14   : > { %p2654_p8 = pnand %p2022_p5, %p324_p7  ;;  %s2523_s28 = smov [#allocation9]  }
  0x15   : > { %s3058_s25 = scalar_select %p2644_p4, 1, 0 }
  0x16   : > { %s3059_s26 = scalar_select %p2649_p6, 1, 0 }
  0x17   : > { %s336_s29 = sshll.u32 %s2523_s28, 4  ;;  %p2176_p9 = pneg %p2654_p8  ;;  %s337_s29 = int_to_ptr.vmem [resolvable:$true] %s336_s29 }
  0x18   : > { %3060 = sst [smem:[#allocation20_spill]] %s3059_s26  ;;  %s2524_s12 = smov [#allocation10]  }
  0x19   : > { %p2663_p11 = pnand %p2176_p9, %p3045_p1  ;;  %s352_s13 = sshll.u32 %s2524_s12, 4  ;;  %s353_s13 = int_to_ptr.vmem [resolvable:$true] %s352_s13 }
  0x1a   : > { %s2525_s14 = smov [#allocation12]   ;;  %s2306_s16 = scalar_lea.vmem %s337_s29, 256 }
  0x1b   : > { %s368_s15 = sshll.u32 %s2525_s14, 4  ;;  %p2297_p12 = pneg %p2663_p11  ;;  %s369_s15 = int_to_ptr.vmem [resolvable:$true] %s368_s15 }
  0x1c   : > { %p2307_p13 = scmp.ne.s32.totalorder %s337_s29, %s2306_s16  ;;  %p2314_p5 = scmp.lt.s32.totalorder %s337_s29, %s337_s29 }
  0x1d   : > { %p2315_p7 = scmp.lt.s32.totalorder %s2306_s16, %s2306_s16 }
  0x1e   : > { %p2309_p0 = pnand %p2307_p13, %p2297_p12 }
  0x1f   : > { %p2316_p9 = por %p2315_p7, %p2314_p5 }
  0x20   : > { %p2310_p3 = pneg %p2309_p0 }
  0x22   : > { %p2317_p10 = pnand %p2316_p9, %p2310_p3 }
  0x24   : > { %2320 = shalt.err (!%p2317_p10)
}
  0x25   : > { %s2526_s24 = smov 64   ;;  %s2527_s28 = smov 4  }
  0x26   : > { %s3063_s3 = sld [smem:[#allocation24_spill]]  ;;  %s2332_s26 = scalar_lea.vmem %s353_s13, 256 }
  0x27   : > { %p2333_p1 = scmp.ne.s32.totalorder %s353_s13, %s2332_s26  ;;  %p2340_p2 = scmp.lt.s32.totalorder %s353_s13, %s353_s13 }
  0x28   : > { %p2341_p6 = scmp.lt.s32.totalorder %s2332_s26, %s2332_s26 }
  0x29   : > { %p2335_p13 = pnand %p2333_p1, %p2297_p12 }
  0x2a   : > { %p2342_p5 = por %p2341_p6, %p2340_p2 }
  0x2b   : > { %p2336_p0 = pneg %p2335_p13 }
  0x2c   : > { %2179 = dma.hbm_to_vmem [thread:$0]  (!%p2663_p11), %s3063_s3, 256, %s337_s29, [#allocation8], %s2526_s24, %s2526_s24, %s2527_s28  }
  0x2d   : > { %p2343_p3 = pnand %p2342_p5, %p2336_p0 }
  0x2f   : > { %2346 = shalt.err (!%p2343_p3)
}
  0x30   : > { %s3064_s5 = sld [smem:[#allocation25_spill]]  ;;  %s2358_s29 = scalar_lea.vmem %s369_s15, 256 }
  0x31   : > { %p2359_p10 = scmp.ne.s32.totalorder %s369_s15, %s2358_s29  ;;  %p2366_p9 = scmp.lt.s32.totalorder %s369_s15, %s369_s15 }
  0x32   : > { %p2367_p13 = scmp.lt.s32.totalorder %s2358_s29, %s2358_s29 }
  0x33   : > { %p2361_p7 = pnand %p2359_p10, %p2297_p12 }
  0x34   : > { %p2368_p4 = por %p2367_p13, %p2366_p9 }
  0x35   : > { %p2362_p1 = pneg %p2361_p7 }
  0x36   : > { %2182 = dma.hbm_to_vmem [thread:$0]  (!%p2663_p11), %s3064_s5, 256, %s353_s13, [#allocation11], %s2526_s24, %s2526_s24, %s2527_s28  }
  0x37   : > { %p2369_p2 = pnand %p2368_p4, %p2362_p1 }
  0x39   : > { %2372 = shalt.err (!%p2369_p2)
}
  0x3a   : > { %s3065_s7 = sld [smem:[#allocation26_spill]]  ;;  %s52_s17 = sadd.s32 1, %s2509_s19 }
  0x3b   : > { %s43_s13 = sadd.s32 1, %s2517_s21  ;;  %p59_p4 = scmp.ne.s32.totalorder %s2509_s19, %s2505_s18 }
  0x3c   : > { %p45_p6 = scmp.ge.s32.totalorder %s43_s13, 2  ;;  %p60_p12 = scmp.eq.s32.totalorder %s2521_s22, 0 }
  0x3d   : > { %p3066_p0 = scmp.eq.s32.totalorder %s2635_s23, 1  ;;  %p2200_p3 = scmp.lt.s32.totalorder %s2521_s22, 2 }
  0x3e   : > { %s3090_s13 = smov (%p45_p6, %s43_s13), 0  ;;  %p61_p10 = por %p60_p12, %p59_p4 }
  0x3f   : > { %p2700_p5 = por %p3066_p0, %p59_p4  ;;  %3069 = sst [smem:[#allocation22_spill]] %s3090_s13 }
  0x40   : > { %2185 = dma.hbm_to_vmem [thread:$0]  (!%p2663_p11), %s3065_s7, 256, %s369_s15, [#allocation11], %s2526_s24, %s2526_s24, %s2527_s28  }
  0x41   : > { %s3067_s30 = scalar_select %p2700_p5, 1, 0 }
  0x42   : > { %s391_s14 = sand.u32 1, %s2509_s19   ;;  %s47_s16 = ssub.s32 %s2517_s21, %s3090_s13 }
  0x43   : > { %3068 = sst [smem:[#allocation21_spill]] %s3067_s30  ;;  %p50_p11 = scmp.eq.s32.totalorder %s47_s16, 0 }
  0x44   : > { %s2027_s15 = sshll.u32 %s391_s14, 2  ;;  %s2028_s24 = sshll.u32 %s2517_s21, 6 }
  0x45   : > { %s2712_s28 = scalar_select %p50_p11, %s2509_s19, %s52_s17  }
  0x46   : > { %s3070_s0 = sld [smem:[#allocation23_spill]]  ;;  %s395_s3 = scalar_lea.vmem [#allocation4], %s2027_s15 }
  0x47   : > { %s403_s5 = sshll.u32 %s395_s3, 4  ;;  %p2719_p7 = pnand %p2200_p3, %p61_p10  ;;  %s404_s5 = int_to_ptr.vmem [resolvable:$true] %s403_s5 }
  0x48   : > { %s2726_s16 = scalar_lea.hbm %s3033_s1, %s2028_s24  ;;  %s410_s17 = sand.u32 1, %s2521_s22  }
  0x49   : > { %s392_s13 = scalar_lea.sflag [#allocation5], %s391_s14  ;;  %p2375_p1 = pneg %p2719_p7 }
  0x4a   : > { %s2386_s29 = scalar_lea.vmem %s404_s5, 64  ;;  %s2528_s3 = smov [#allocation4]  }
  0x4b   : > { %p2387_p9 = scmp.ne.s32.totalorder %s404_s5, %s2386_s29  ;;  %s2391_s26 = sshll.u32 %s2528_s3, 4  ;;  %s2392_s26 = int_to_ptr.vmem [resolvable:$false] %s2391_s26 }
  0x4c   : > { %s401_s12 = scalar_lea.hbm %s3070_s0, %s2028_s24  ;;  %s2393_s0 = scalar_lea.vmem %s2392_s26, 128 }
  0x4d   : > { %p2389_p13 = pnand %p2387_p9, %p2375_p1  ;;  %p2394_p4 = scmp.lt.s32.totalorder %s404_s5, %s2392_s26 }
  0x4e   : > { %p2395_p6 = scmp.lt.s32.totalorder %s2393_s0, %s2386_s29 }
  0x4f   : > { %p2390_p2 = pneg %p2389_p13 }
  0x50   : > { %p2396_p12 = por %p2395_p6, %p2394_p4 }
  0x52   : > { %p2397_p0 = pnand %p2396_p12, %p2390_p2 }
  0x54   : > { %2400 = shalt.err (!%p2397_p0)
}
  0x55   : > { %2189 = dma.hbm_to_vmem [thread:$0]  (!%p2719_p7), %s401_s12, 64, %s404_s5, %s392_s13  }
  0x56   : > { %s414_s11 = scalar_lea.vmem [#allocation7], %s2027_s15  ;;  %s411_s14 = scalar_lea.sflag [#allocation8], %s410_s17 }
  0x57   : > { %s421_s30 = sshll.u32 %s414_s11, 4  ;;  %s2529_s3 = smov [#allocation7]   ;;  %s422_s30 = int_to_ptr.vmem [resolvable:$true] %s421_s30 }
  0x58   : > { %s2414_s24 = scalar_lea.vmem %s422_s30, 64  ;;  %s2419_s26 = sshll.u32 %s2529_s3, 4  ;;  %s2420_s26 = int_to_ptr.vmem [resolvable:$false] %s2419_s26 }
  0x59   : > { %p2415_p3 = scmp.ne.s32.totalorder %s422_s30, %s2414_s24  ;;  %s2421_s0 = scalar_lea.vmem %s2420_s26, 128 }
  0x5a   : > { %p2422_p9 = scmp.lt.s32.totalorder %s422_s30, %s2420_s26  ;;  %p2423_p13 = scmp.lt.s32.totalorder %s2421_s0, %s2414_s24 }
  0x5b   : > { %p2417_p10 = pnand %p2415_p3, %p2375_p1 }
  0x5c   : > { %p2424_p2 = por %p2423_p13, %p2422_p9 }
  0x5d   : > { %p2418_p11 = pneg %p2417_p10 }
  0x5f   : > { %p2425_p4 = pnand %p2424_p2, %p2418_p11 }
  0x61   : > { %2428 = shalt.err (!%p2425_p4)
}
  0x62   : > { %2192 = dma.hbm_to_vmem [thread:$0]  (!%p2719_p7), %s2726_s16, 64, %s422_s30, %s411_s14  }
  0x63   : > { %436 = sbr.rel (%p2654_p8) target bundleno = 1855 (0x73f), region = 64  ;;  %s2745_s5 = sand.u32 (!%p2654_p8), 1, %s2505_s18  }
  0x64   : > { %s2748_s13 = sshll.u32 (!%p2654_p8), %s2745_s5, 2  ;;  %s439_s15 = scalar_lea.sflag (!%p2654_p8), [#allocation5], %s2745_s5 }
  0x65   : > { %s442_s12 = scalar_lea.vmem (!%p2654_p8), [#allocation4], %s2748_s13  ;;  %p3072_p1 = scmp.ne.s32.totalorder (!%p2654_p8), %s3058_s25, 0 }
  0x68   : > { %2480 = dma.done.wait (%p3072_p1), %s439_s15, 64  }
  0x69   : > { %2482 = vsyncadd (%p3072_p1), %s439_s15, 4294967232  ;;  %s447_s7 = sand.u32 1, %s2635_s23   ;;  %s451_s16 = scalar_lea.vmem [#allocation7], %s2748_s13 }
  0x6a   : > { %s448_s27 = scalar_lea.sflag [#allocation8], %s447_s7 }
  0x6b   : > { %2484 = dma.done.wait (%p3072_p1), %s448_s27, 64  }
  0x6c   : > { %2486 = vsyncadd (%p3072_p1), %s448_s27, 4294967232  ;;  %p3073_p8 = scmp.eq.s32.totalorder %s2635_s23, 0 }
  0x6e   : > { %2488 = dma.done.wait (%p3073_p8), [#allocation8], 256   ;;  %p3074_p7 = pmov %p3073_p8 }
  0x70   : > { %2490 = vsyncadd (%p3074_p7), [#allocation8], 4294967040  ;;  %p3075_p6 = pmov %p3074_p7 }
  0x72   : > { %2492 = dma.done.wait (%p3075_p6), [#allocation11], 512   ;;  %p3076_p12 = pmov %p3075_p6 }
  0x73   : > { %v2530_v0 = vmov 0.0   ;;  %vm2531_vm0 = vmmov 0   ;;  %v2271_v1 = vld [vmem:[#allocation10 + $0x8] sm:$0xff]   ;;  %v2272_v2 = vld [vmem:[#allocation9 + $0x8] sm:$0xff]   ;;  %v2273_v3 = vld [vmem:[#allocation10] sm:$0xff]   ;;  %vm541_vm1 = vcmask 261120   ;;  %v525_v7 = vlaneseq }
  0x74   : > { %2494 = vsyncadd (%p3076_p12), [#allocation11], 4294966784  ;;  %2086 = vmatprep.subr.bf16.mxu0 %v2530_v0  ;;  %2094 = vmatprep.subr.bf16.mxu1 %v2530_v0  ;;  %v2274_v4 = vld [vmem:[#allocation9] sm:$0xff]   ;;  %v518_v5 = vld [vmem:[%s451_s16] sm:$0xf]  ;;  %s2532_s11 = smov 104  }
  0x75   : > { %2090 = vmatprep.mubr.msk.bf16.mxu0 %vm2531_vm0, %v2530_v0  ;;  %2098 = vmatprep.mubr.msk.bf16.mxu1 %vm2531_vm0, %v2530_v0  ;;  %v2778_v6 = vld [vmem:[%s442_s12] sm:$0xf]  ;;  %v526_v8 = vshrl.u32 %v525_v7, 7  ;;  %s2533_s30 = smov 120   ;;  %s2534_s14 = smov 112   ;;  %v2537_v49 = vmov 0  }
  0x76   : > { %2087 = vmatpush3.bf16.msra.mxu0 %v2271_v1  ;;  %2095 = vmatpush3.bf16.msra.mxu1 %v2272_v2  ;;  %v523_v9 = vld [vmem:[%s3038_s6] sm:$0x1]  ;;  %v2535_v29 = vmov 1983009808   ;;  %v2536_v31 = vmov 1934713408  }
  0x77   : > { %2088 = vmatprep.subr.bf16.mxu0 %v2530_v0  ;;  %2096 = vmatprep.subr.bf16.mxu1 %v2530_v0  ;;  %v946_v10 = vld [vmem:[%s3036_s4] sm:$0x1]  ;;  %v524_v11 = vunpack.c.l.bf16 %v523_v9  ;;  %v2795_v12 = vsub.s32 0, %v526_v8  ;;  %v594_v30 = vunpack.c.l.s4 %v2535_v29  ;;  %v611_v32 = vunpack.c.l.s4 %v2536_v31  ;;  %p510_p0 = scmp.lt.s32.totalorder %s2513_s20, 1  ;;  %s2539_s15 = smov 96  }
  0x78   : > { %v947_v13 = vunpack.c.l.bf16 %v946_v10  ;;  %vm758_vm2 = vcmask 60416   ;;  %vm1191_vm3 = vcmask 64512   ;;  %vm1431_vm5 = vcmask 1043456   ;;  %s2540_s12 = smov 16   ;;  %s2541_s7 = smov 8  }
  0x79   : > { %v528_v14 = vrot.slane %v524_v11, %v2795_v12  ;;  %v595_v33 = vunpack.c.0.s8 %v594_v30  ;;  %v612_v34 = vunpack.c.0.s8 %v611_v32  ;;  %s511_s24 = scalar_select %p510_p0, %s2513_s20, 1  ;;  %vm1762_vm6 = vcmask 130048  }
  0x7a   : > { %2089 = vmatpush3.bf16.msra.mxu0 %v2273_v3  ;;  %2097 = vmatpush3.bf16.msra.mxu1 %v2274_v4  ;;  %v951_v15 = vrot.slane %v947_v13, %v2795_v12  ;;  %s2542_s27 = smov 24   ;;  %vm1764_vm7 = vcmask 195584   ;;  %vm1863_vm8 = vcmask 257024   ;;  %s2543_s16 = smov [#allocation13]  }
  0x7b   : > { %2102 = vmatprep.subr.bf16.mxu0 %v2530_v0  ;;  %2108 = vmatprep.subr.bf16.mxu1 %v2530_v0  ;;  %v2804_v35 = vsub.s32 %v595_v33, %v526_v8  ;;  %v2810_v38 = vsub.s32 %v612_v34, %v526_v8  ;;  %s512_s0 = scalar_lea.vmem %s3034_s2, %s511_s24  ;;  %s509_s24 = scalar_lea.vmem [#allocation13], %s2748_s13 }
  0x7c   : > { %s1880_s3 = sshll.u32 %s509_s24, 4  ;;  %s2433_s23 = sshll.u32 %s2543_s16, 4  ;;  %s1881_s3 = int_to_ptr.vmem [resolvable:$true] %s1880_s3  ;;  %s2434_s23 = int_to_ptr.vmem [resolvable:$false] %s2433_s23 }
  0x7d   : > { %2091 = vmatmul.mubr.msk.bf16.vlgmr.msra.gmra.mxu0 %vm541_vm1, %v518_v5  ;;  %2099 = vmatmul.mubr.msk.bf16.vlgmr.msra.gmra.mxu1 %vm541_vm1, %v2778_v6  ;;  %p2436_p9 = scmp.lt.s32.totalorder %s1881_s3, %s2434_s23 }
  0x7e   : > { %2104 = vmatprep.mubr.msk.bf16.mxu0 %vm2531_vm0, %v2530_v0  ;;  %2110 = vmatprep.mubr.msk.bf16.mxu1 %vm2531_vm0, %v2530_v0 }
 0x13d   : > { %v579_v16 = vpop.f32.mrf.mxu0  ;;  %v1002_v18 = vpop.f32.mrf.mxu1 }
 0x13e   : > { %v580_v17 = vadd.f32 %v579_v16, %v528_v14  ;;  %v1003_v20 = vadd.f32 %v1002_v18, %v951_v15 }
 0x13f   : > { %v2092_v19 = vpop.f32.mrf.mxu0  ;;  %v2100_v22 = vpop.f32.mrf.mxu1 }
 0x140   : > { %v2799_v21 = vpack.c.bf16 %v580_v17, %v580_v17  ;;  %v1008_v23 = vmul.f32 0.35355338, %v1003_v20 }
 0x141   : > { %v582_v24 = vpop.f32.mrf.mxu0  ;;  %v1005_v25 = vpop.f32.mrf.mxu1 }
 0x142   : > { %591 = vrot.lane.b32.xlu1 %v2799_v21, %s2532_s11  ;;  %587 = vrot.lane.b32.xlu0 %v2799_v21, %s2533_s30  ;;  %v1009_v26 = vpack.c.bf16 %v1008_v23, %v1008_v23  ;;  %v599_v48 = vrot.slane %v2799_v21, %v2804_v35 }
 0x143   : > { %v2093_v27 = vpop.f32.mrf.mxu0  ;;  %v2101_v28 = vpop.f32.mrf.mxu1 }
 0x144   : > { %v1023_v56 = vrot.slane %v1009_v26, %v2804_v35 }
 0x146   : > { %1011 = vrot.lane.b32.xlu1 %v1009_v26, %s2533_s30  ;;  %589 = vrot.lane.b32.xlu0 %v2799_v21, %s2534_s14 }
 0x14a   : > { %1015 = vrot.lane.b32.xlu1 %v1009_v26, %s2532_s11  ;;  %1013 = vrot.lane.b32.xlu0 %v1009_v26, %s2534_s14  ;;  %s2058_s14 = sshll.u32 %s2513_s20, 6  ;;  %s2435_s20 = scalar_lea.vmem %s2434_s23, 128 }
 0x1b4   : > { %v2806_v36 = vpop.permute.xlu1 %591  ;;  %v2808_v37 = vpop.permute.xlu0 %587 }
 0x1b5   : > { %v641_v39 = vrot.slane %v2806_v36, %v2804_v35  ;;  %v633_v40 = vrot.slane %v2808_v37, %v2804_v35 }
 0x1b7   : > { %v642_v41 = vcombine.low %v633_v40, %v641_v39  ;;  %v643_v42 = vcombine.high %v633_v40, %v641_v39 }
 0x1b8   : > { %v1012_v43 = vpop.permute.xlu1 %1011  ;;  %v2816_v44 = vpop.permute.xlu0 %589 }
 0x1b9   : > { %v650_v45 = vrot.slane %v642_v41, %v2810_v38  ;;  %v657_v46 = vrot.slane %v643_v42, %v2810_v38  ;;  %v607_v47 = vrot.slane %v2816_v44, %v2804_v35  ;;  %v1057_v52 = vrot.slane %v1012_v43, %v2804_v35 }
 0x1bb   : > { %v658_v50 = vcombine.high %v650_v45, %v2537_v49  ;;  %v659_v51 = vcombine.high %v657_v46, %v2537_v49  ;;  %v608_v53 = vcombine.low %v599_v48, %v607_v47  ;;  %v609_v54 = vcombine.high %v599_v48, %v607_v47 }
 0x1bc   : > { %v1016_v55 = vpop.permute.xlu1 %1015  ;;  %v1014_v57 = vpop.permute.xlu0 %1013  ;;  %v665_v58 = vshrl.u32 %v650_v45, 16  ;;  %v681_v59 = vshrl.u32 %v657_v46, 16 }
 0x1bd   : > { %v1065_v60 = vrot.slane %v1016_v55, %v2804_v35  ;;  %v1031_v61 = vrot.slane %v1014_v57, %v2804_v35  ;;  %v673_v62 = vshrl.u32 %v658_v50, 16  ;;  %v689_v63 = vshrl.u32 %v659_v51, 16 }
 0x1be   : > { %v616_v1 = vrot.slane %v608_v53, %v2810_v38  ;;  %v623_v2 = vrot.slane %v609_v54, %v2810_v38 }
 0x1bf   : > { %v1066_v3 = vcombine.low %v1057_v52, %v1065_v60  ;;  %v1067_v4 = vcombine.high %v1057_v52, %v1065_v60  ;;  %v1032_v5 = vcombine.low %v1023_v56, %v1031_v61  ;;  %v1033_v7 = vcombine.high %v1023_v56, %v1031_v61 }
 0x1c0   : > { %v624_v8 = vcombine.high %v616_v1, %v2537_v49  ;;  %v625_v9 = vcombine.high %v623_v2, %v2537_v49  ;;  %v662_v10 = vpack.i.b16 %v650_v45, %v616_v1  ;;  %v664_v11 = vshrl.u32 %v616_v1, 16 }
 0x1c1   : > { %v678_v13 = vpack.i.b16 %v657_v46, %v623_v2  ;;  %v680_v14 = vshrl.u32 %v623_v2, 16  ;;  %v1074_v15 = vrot.slane %v1066_v3, %v2810_v38  ;;  %v1081_v16 = vrot.slane %v1067_v4, %v2810_v38 }
 0x1c2   : > { %v666_v17 = vpack.i.b16 %v665_v58, %v664_v11  ;;  %v670_v18 = vpack.i.b16 %v658_v50, %v624_v8  ;;  %v672_v19 = vshrl.u32 %v624_v8, 16  ;;  %v686_v20 = vpack.i.b16 %v659_v51, %v625_v9 }
 0x1c3   : > { %v682_v22 = vpack.i.b16 %v681_v59, %v680_v14  ;;  %v688_v23 = vshrl.u32 %v625_v9, 16  ;;  %v692_v24 = vcombine.low %v662_v10, %v678_v13  ;;  %v1082_v25 = vcombine.high %v1074_v15, %v2537_v49 }
 0x1c4   : > { %v674_v26 = vpack.i.b16 %v673_v62, %v672_v19  ;;  %v700_v27 = vcombine.low %v670_v18, %v686_v20  ;;  %v1083_v28 = vcombine.high %v1081_v16, %v2537_v49  ;;  %v1089_v33 = vshrl.u32 %v1074_v15, 16 }
 0x1c5   : > { %v690_v29 = vpack.i.b16 %v689_v63, %v688_v23  ;;  %v717_v30 = vcombine.low %v666_v17, %v682_v22  ;;  %v699_v31 = vrot.slane %v692_v24, %v2804_v35  ;;  %v1040_v34 = vrot.slane %v1032_v5, %v2810_v38 }
 0x1c6   : > { %v707_v32 = vrot.slane %v700_v27, %v2804_v35  ;;  %v1097_v40 = vshrl.u32 %v1082_v25, 16  ;;  %v1105_v41 = vshrl.u32 %v1081_v16, 16  ;;  %v1047_v42 = vrot.slane %v1033_v7, %v2810_v38 }
 0x1c7   : > { %v725_v39 = vcombine.low %v674_v26, %v690_v29  ;;  %v1113_v45 = vshrl.u32 %v1083_v28, 16  ;;  %v1048_v46 = vcombine.high %v1040_v34, %v2537_v49  ;;  %v1088_v47 = vshrl.u32 %v1040_v34, 16 }
 0x1c8   : > { %v708_v43 = vcombine.low %v699_v31, %v707_v32  ;;  %v724_v48 = vrot.slane %v717_v30, %v2804_v35  ;;  %v1049_v51 = vcombine.high %v1047_v42, %v2537_v49  ;;  %v1104_v52 = vshrl.u32 %v1047_v42, 16 }
 0x1c9   : > { %v732_v50 = vrot.slane %v725_v39, %v2804_v35  ;;  %v1090_v54 = vpack.i.b16 %v1089_v33, %v1088_v47  ;;  %v1094_v55 = vpack.i.b16 %v1082_v25, %v1048_v46  ;;  %v1096_v56 = vshrl.u32 %v1048_v46, 16 }
 0x1ca   : > { %v715_v53 = vrot.slane %v708_v43, %v2810_v38  ;;  %v1106_v58 = vpack.i.b16 %v1105_v41, %v1104_v52  ;;  %v1110_v59 = vpack.i.b16 %v1083_v28, %v1049_v51  ;;  %v1112_v60 = vshrl.u32 %v1049_v51, 16  ;;  %v1182_v52 = vld [vmem:[%s512_s0] sm:$0x1] }
 0x1cb   : > { %v733_v57 = vcombine.low %v724_v48, %v732_v50  ;;  %v1086_v61 = vpack.i.b16 %v1074_v15, %v1040_v34  ;;  %v1098_v62 = vpack.i.b16 %v1097_v40, %v1096_v56  ;;  %v1102_v63 = vpack.i.b16 %v1081_v16, %v1047_v42 }
 0x1cc   : > { %v716_v1 = vcombine.high %v715_v53, %v2537_v49  ;;  %v1114_v3 = vpack.i.b16 %v1113_v45, %v1112_v60  ;;  %v746_v4 = vshrl.u32 %v715_v53, 16  ;;  %v1124_v5 = vcombine.low %v1094_v55, %v1110_v59 }
 0x1cd   : > { %v740_v2 = vrot.slane %v733_v57, %v2810_v38  ;;  %v1141_v10 = vcombine.low %v1090_v54, %v1106_v58  ;;  %v1116_v11 = vcombine.low %v1086_v61, %v1102_v63  ;;  %vm1183_vm4 = vcmp.ne.f32.partialorder %v1182_v52, 0.0 }
 0x1ce   : > { %v1149_v13 = vcombine.low %v1098_v62, %v1114_v3  ;;  %v754_v15 = vshrl.u32 %v716_v1, 16  ;;  %v1131_v20 = vrot.slane %v1124_v5, %v2804_v35 }
 0x1cf   : > { %v741_v7 = vcombine.high %v740_v2, %v2537_v49  ;;  %v744_v8 = vpack.i.b16 %v740_v2, %v715_v53  ;;  %v747_v9 = vshrl.u32 %v740_v2, 16  ;;  %v1148_v22 = vrot.slane %v1141_v10, %v2804_v35 }
 0x1d0   : > { %v1156_v16 = vrot.slane %v1149_v13, %v2804_v35  ;;  %v1123_v23 = vrot.slane %v1116_v11, %v2804_v35  ;;  %v2538_v53 = vmov -1e+09  }
 0x1d1   : > { %v748_v14 = vpack.i.b16 %v747_v9, %v746_v4  ;;  %v752_v17 = vpack.i.b16 %v741_v7, %v716_v1  ;;  %v755_v18 = vshrl.u32 %v741_v7, 16  ;;  %759 = vst.msk [vmem:[#allocation2] sm:$0xf] %vm758_vm2, %v744_v8  ;;  %v1184_v54 = vsel %vm1183_vm4, 0.0, %v2538_v53 }
 0x1d2   : > { %v1157_v24 = vcombine.low %v1148_v22, %v1156_v16  ;;  %v1132_v25 = vcombine.low %v1123_v23, %v1131_v20  ;;  %v1189_v55 = vrot.slane %v1184_v54, %v2795_v12 }
 0x1d3   : > { %v756_v19 = vpack.i.b16 %v755_v18, %v754_v15  ;;  %760 = vst.msk [vmem:[#allocation2 + $0x4] sm:$0xf] %vm758_vm2, %v748_v14  ;;  %761 = vst.msk [vmem:[#allocation2 + $0x8] sm:$0xf] %vm758_vm2, %v752_v17 }
 0x1d4   : > { %v1164_v28 = vrot.slane %v1157_v24, %v2810_v38  ;;  %v1139_v31 = vrot.slane %v1132_v25, %v2810_v38 }
 0x1d5   : > { %762 = vst.msk [vmem:[#allocation2 + $0xc] sm:$0xf] %vm758_vm2, %v756_v19 }
 0x1d6   : > { %v1170_v32 = vshrl.u32 %v1164_v28, 16  ;;  %v1168_v34 = vpack.i.b16 %v1164_v28, %v1139_v31  ;;  %v1169_v39 = vshrl.u32 %v1139_v31, 16  ;;  %v1165_v43 = vcombine.high %v1164_v28, %v2537_v49 }
 0x1d7   : > { %v1140_v46 = vcombine.high %v1139_v31, %v2537_v49 }
 0x1d8   : > { %v1178_v26 = vld [vmem:[#allocation2] sm:$0xf]  ;;  %v1171_v42 = vpack.i.b16 %v1170_v32, %v1169_v39  ;;  %v1176_v47 = vshrl.u32 %v1165_v43, 16 }
 0x1d9   : > { %v1196_v27 = vsel %vm1191_vm3, %v1178_v26, 0  ;;  %v1174_v48 = vpack.i.b16 %v1165_v43, %v1140_v46  ;;  %v1175_v50 = vshrl.u32 %v1140_v46, 16 }
 0x1da   : > { %2103 = vmatpush3.bf16.xpose.msra.mxu0 %v1196_v27  ;;  %v1179_v29 = vld [vmem:[#allocation2 + $0x4] sm:$0xf]  ;;  %v1180_v33 = vld [vmem:[#allocation2 + $0x8] sm:$0xf] }
 0x1db   : > { %v1242_v30 = vsel %vm1191_vm3, %v1179_v29, 0  ;;  %2114 = vmatprep.subr.bf16.mxu0 %v2530_v0  ;;  %v1288_v41 = vsel %vm1191_vm3, %v1180_v33, 0  ;;  %v1177_v51 = vpack.i.b16 %v1176_v47, %v1175_v50 }
 0x1dc   : > { %2109 = vmatpush3.bf16.xpose.msra.mxu1 %v1242_v30  ;;  %v1181_v40 = vld [vmem:[#allocation2 + $0xc] sm:$0xf] }
 0x1dd   : > { %2120 = vmatprep.subr.bf16.mxu1 %v2530_v0  ;;  %v1334_v45 = vsel %vm1191_vm3, %v1181_v40, 0 }
 0x1e1   : > { %2105 = vmatmul.mubr.msk.bf16.vlgmr.msra.gmra.mxu0 %vm1191_vm3, %v1168_v34 }
 0x1e2   : > { %2115 = vmatpush3.bf16.xpose.msra.mxu0 %v1288_v41  ;;  %2116 = vmatprep.mubr.msk.bf16.mxu0 %vm2531_vm0, %v2530_v0 }
 0x1e3   : > { %2111 = vmatmul.mubr.msk.bf16.vlgmr.msra.gmra.mxu1 %vm1191_vm3, %v1171_v42  ;;  %2126 = vmatprep.subr.bf16.mxu0 %v2530_v0 }
 0x1e4   : > { %2121 = vmatpush3.bf16.xpose.msra.mxu1 %v1334_v45  ;;  %2122 = vmatprep.mubr.msk.bf16.mxu1 %vm2531_vm0, %v2530_v0 }
 0x1e5   : > { %2132 = vmatprep.subr.bf16.mxu1 %v2530_v0 }
 0x1e9   : > { %2117 = vmatmul.mubr.msk.bf16.vlgmr.msra.gmra.mxu0 %vm1191_vm3, %v1174_v48 }
 0x1ea   : > { %2128 = vmatprep.mubr.msk.bf16.mxu0 %vm2531_vm0, %v2530_v0 }
 0x1eb   : > { %2123 = vmatmul.mubr.msk.bf16.vlgmr.msra.gmra.mxu1 %vm1191_vm3, %v1177_v51 }
 0x1ec   : > { %2134 = vmatprep.mubr.msk.bf16.mxu1 %vm2531_vm0, %v2530_v0 }
 0x2a1   : > { %v1232_v56 = vpop.f32.mrf.mxu0 }
 0x2a2   : > { %v1233_v57 = vadd.f32 %v1232_v56, %v1189_v55 }
 0x2a3   : > { %v2106_v58 = vpop.f32.mrf.mxu0  ;;  %v1278_v59 = vpop.f32.mrf.mxu1 }
 0x2a4   : > { %v1279_v60 = vadd.f32 %v1278_v59, %v1189_v55  ;;  %v1376_v61 = vsel %vm1191_vm3, %v1233_v57, -inf }
 0x2a5   : > { %v2112_v62 = vpop.f32.mrf.mxu1  ;;  %1377 = vmax.xlane.f32.xlu0 %v1376_v61  ;;  %v1235_v63 = vpop.f32.mrf.mxu0 }
 0x2a6   : > { %v1379_v1 = vsel %vm1191_vm3, %v1279_v60, -inf }
 0x2a7   : > { %1380 = vmax.xlane.f32.xlu1 %v1379_v1  ;;  %v2107_v2 = vpop.f32.mrf.mxu0  ;;  %v1281_v3 = vpop.f32.mrf.mxu1 }
 0x2a9   : > { %v2113_v4 = vpop.f32.mrf.mxu1  ;;  %v1324_v5 = vpop.f32.mrf.mxu0 }
 0x2aa   : > { %v1325_v7 = vadd.f32 %v1324_v5, %v1189_v55 }
 0x2ab   : > { %v2118_v8 = vpop.f32.mrf.mxu0  ;;  %v1370_v9 = vpop.f32.mrf.mxu1 }
 0x2ac   : > { %v1371_v10 = vadd.f32 %v1370_v9, %v1189_v55  ;;  %v1382_v11 = vsel %vm1191_vm3, %v1325_v7, -inf }
 0x2ad   : > { %v2124_v13 = vpop.f32.mrf.mxu1  ;;  %1383 = vmax.xlane.f32.xlu0 %v1382_v11  ;;  %v1327_v14 = vpop.f32.mrf.mxu0 }
 0x2ae   : > { %v1385_v18 = vsel %vm1191_vm3, %v1371_v10, -inf }
 0x2af   : > { %v2119_v17 = vpop.f32.mrf.mxu0  ;;  %v1373_v15 = vpop.f32.mrf.mxu1 }
 0x2b1   : > { %v2125_v16 = vpop.f32.mrf.mxu1  ;;  %1386 = vmax.xlane.f32.xlu0 %v1385_v18 }
 0x2b8   : > { %763 = vrot.lane.b32.xlu1 %v2799_v21, %s2539_s15 }
 0x2bc   : > { %767 = vrot.lane.b32.xlu1 %v2816_v44, %s2539_s15 }
 0x2c0   : > { %769 = vrot.lane.b32.xlu1 %v2806_v36, %s2539_s15 }
 0x2c7   : > { %765 = vrot.lane.b32.xlu0 %v2808_v37, %s2539_s15  ;;  %s3078_s15 = sld [smem:[#allocation27_spill]] }
 0x32e   : > { %v1378_v19 = vpop.xlane.xlu0 %1377 }
 0x32f   : > { %v1388_v20 = vsub.f32 %v1233_v57, %v1378_v19 }
 0x330   : > { %v1381_v22 = vpop.xlane.xlu1 %1380 }
 0x331   : > { %v1392_v23 = vmul.f32 1.442695, %v1388_v20  ;;  %v1389_v24 = vsub.f32 %v1279_v60, %v1381_v22 }
 0x333   : > { %2277 = vpow2.f32 %v1392_v23  ;;  %v1394_v25 = vmul.f32 1.442695, %v1389_v24 }
 0x334   : > { %v764_v26 = vpop.permute.xlu1 %763 }
 0x335   : > { %2279 = vpow2.f32 %v1394_v25  ;;  %v778_v21 = vrot.slane %v764_v26, %v2804_v35 }
 0x336   : > { %v1384_v27 = vpop.xlane.xlu0 %1383 }
 0x337   : > { %v1390_v28 = vsub.f32 %v1325_v7, %v1384_v27 }
 0x338   : > { %v768_v29 = vpop.permute.xlu1 %767 }
 0x339   : > { %v1396_v30 = vmul.f32 1.442695, %v1390_v28  ;;  %v786_v44 = vrot.slane %v768_v29, %v2804_v35 }
 0x33a   : > { %v1387_v36 = vpop.xlane.xlu0 %1386 }
 0x33b   : > { %2281 = vpow2.f32 %v1396_v30  ;;  %v787_v37 = vcombine.low %v778_v21, %v786_v44  ;;  %v788_v31 = vcombine.high %v778_v21, %v786_v44  ;;  %v1391_v32 = vsub.f32 %v1371_v10, %v1387_v36 }
 0x33c   : > { %v770_v34 = vpop.permute.xlu1 %769 }
 0x33d   : > { %v1398_v33 = vmul.f32 1.442695, %v1391_v32  ;;  %v795_v40 = vrot.slane %v787_v37, %v2810_v38  ;;  %v802_v41 = vrot.slane %v788_v31, %v2810_v38  ;;  %v820_v43 = vrot.slane %v770_v34, %v2804_v35 }
 0x33e   : > { %v766_v39 = vpop.permute.xlu0 %765 }
 0x33f   : > { %2283 = vpow2.f32 %v1398_v33  ;;  %v812_v45 = vrot.slane %v766_v39, %v2804_v35  ;;  %v803_v51 = vcombine.high %v795_v40, %v2537_v49  ;;  %v804_v52 = vcombine.high %v802_v41, %v2537_v49 }
 0x340   : > { %v2900_v42 = vpop.eup %2277  ;;  %v843_v56 = vshrl.u32 %v795_v40, 16  ;;  %v859_v57 = vshrl.u32 %v802_v41, 16 }
 0x341   : > { %v1400_v46 = vsel %vm1191_vm3, %v2900_v42, 0.0  ;;  %v821_v48 = vcombine.low %v812_v45, %v820_v43  ;;  %v822_v50 = vcombine.high %v812_v45, %v820_v43  ;;  %v851_v62 = vshrl.u32 %v803_v51, 16 }
 0x342   : > { %v2906_v47 = vpop.eup %2279  ;;  %1401 = vadd.xlane.f32.xlu0 %v1400_v46  ;;  %v867_v63 = vshrl.u32 %v804_v52, 16 }
 0x343   : > { %v1403_v53 = vsel %vm1191_vm3, %v2906_v47, 0.0  ;;  %v829_v54 = vrot.slane %v821_v48, %v2810_v38  ;;  %v836_v55 = vrot.slane %v822_v50, %v2810_v38 }
 0x344   : > { %1404 = vadd.xlane.f32.xlu1 %v1403_v53 }
 0x345   : > { %v837_v58 = vcombine.high %v829_v54, %v2537_v49  ;;  %v838_v59 = vcombine.high %v836_v55, %v2537_v49  ;;  %v841_v60 = vpack.i.b16 %v829_v54, %v795_v40  ;;  %v844_v61 = vshrl.u32 %v829_v54, 16 }
 0x346   : > { %v857_v1 = vpack.i.b16 %v836_v55, %v802_v41  ;;  %v860_v2 = vshrl.u32 %v836_v55, 16 }
 0x347   : > { %v845_v4 = vpack.i.b16 %v844_v61, %v843_v56  ;;  %v849_v5 = vpack.i.b16 %v837_v58, %v803_v51  ;;  %v852_v7 = vshrl.u32 %v837_v58, 16  ;;  %v865_v8 = vpack.i.b16 %v838_v59, %v804_v52 }
 0x348   : > { %v2916_v3 = vpop.eup %2281  ;;  %v861_v9 = vpack.i.b16 %v860_v2, %v859_v57  ;;  %v868_v10 = vshrl.u32 %v838_v59, 16  ;;  %v871_v11 = vcombine.low %v841_v60, %v857_v1 }
 0x349   : > { %v1406_v13 = vsel %vm1191_vm3, %v2916_v3, 0.0  ;;  %v853_v14 = vpack.i.b16 %v852_v7, %v851_v62  ;;  %v879_v17 = vcombine.low %v849_v5, %v865_v8 }
 0x34a   : > { %1407 = vadd.xlane.f32.xlu0 %v1406_v13  ;;  %v869_v15 = vpack.i.b16 %v868_v10, %v867_v63  ;;  %v896_v18 = vcombine.low %v845_v4, %v861_v9  ;;  %v878_v16 = vrot.slane %v871_v11, %v2804_v35 }
 0x34b   : > { %v886_v19 = vrot.slane %v879_v17, %v2804_v35 }
 0x34c   : > { %v2922_v20 = vpop.eup %2283  ;;  %v904_v22 = vcombine.low %v853_v14, %v869_v15  ;;  %v903_v25 = vrot.slane %v896_v18, %v2804_v35 }
 0x34d   : > { %v887_v23 = vcombine.low %v878_v16, %v886_v19  ;;  %v1409_v24 = vsel %vm1191_vm3, %v2922_v20, 0.0 }
 0x34e   : > { %v911_v26 = vrot.slane %v904_v22, %v2804_v35  ;;  %1410 = vadd.xlane.f32.xlu0 %v1409_v24 }
 0x34f   : > { %v894_v27 = vrot.slane %v887_v23, %v2810_v38 }
 0x350   : > { %v912_v28 = vcombine.low %v903_v25, %v911_v26 }
 0x351   : > { %v895_v29 = vcombine.high %v894_v27, %v2537_v49  ;;  %v925_v36 = vshrl.u32 %v894_v27, 16 }
 0x352   : > { %v919_v21 = vrot.slane %v912_v28, %v2810_v38 }
 0x353   : > { %v933_v33 = vshrl.u32 %v895_v29, 16 }
 0x354   : > { %v920_v30 = vcombine.high %v919_v21, %v2537_v49  ;;  %v923_v44 = vpack.i.b16 %v919_v21, %v894_v27  ;;  %v926_v37 = vshrl.u32 %v919_v21, 16 }
 0x356   : > { %v927_v31 = vpack.i.b16 %v926_v37, %v925_v36  ;;  %v931_v32 = vpack.i.b16 %v920_v30, %v895_v29  ;;  %v934_v34 = vshrl.u32 %v920_v30, 16  ;;  %937 = vst.msk [vmem:[#allocation3] sm:$0xf] %vm758_vm2, %v923_v44  ;;  %v2275_v36 = vld [vmem:[#allocation12 + $0x8] sm:$0xff]  }
 0x358   : > { %v935_v39 = vpack.i.b16 %v934_v34, %v933_v33  ;;  %938 = vst.msk [vmem:[#allocation3 + $0x4] sm:$0xf] %vm758_vm2, %v927_v31  ;;  %939 = vst.msk [vmem:[#allocation3 + $0x8] sm:$0xf] %vm758_vm2, %v931_v32 }
 0x35a   : > { %940 = vst.msk [vmem:[#allocation3 + $0xc] sm:$0xf] %vm758_vm2, %v935_v39 }
 0x35d   : > { %v1424_v40 = vld [vmem:[#allocation3] sm:$0xf] }
 0x35e   : > { %v1433_v49 = vsel %vm1431_vm5, %v1424_v40, 0 }
 0x35f   : > { %2127 = vmatpush3.bf16.msra.mxu0 %v1433_v49  ;;  %v1425_v41 = vld [vmem:[#allocation3 + $0x4] sm:$0xf]  ;;  %v1426_v54 = vld [vmem:[#allocation3 + $0x8] sm:$0xf] }
 0x360   : > { %v1479_v43 = vsel %vm1431_vm5, %v1425_v41, 0  ;;  %2138 = vmatprep.subr.bf16.mxu0 %v2530_v0  ;;  %v1525_v58 = vsel %vm1431_vm5, %v1426_v54, 0 }
 0x361   : > { %2133 = vmatpush3.bf16.msra.mxu1 %v1479_v43  ;;  %v1427_v57 = vld [vmem:[#allocation3 + $0xc] sm:$0xf] }
 0x362   : > { %2144 = vmatprep.subr.bf16.mxu1 %v2530_v0  ;;  %v1571_v60 = vsel %vm1431_vm5, %v1427_v57, 0 }
 0x3cb   : > { %v1402_v45 = vpop.xlane.xlu0 %1401 }
 0x3cc   : > { %2285 = vrcp.f32 %v1402_v45 }
 0x3cd   : > { %v1405_v46 = vpop.xlane.xlu1 %1404 }
 0x3ce   : > { %2287 = vrcp.f32 %v1405_v46 }
 0x3d3   : > { %v1408_v48 = vpop.xlane.xlu0 %1407 }
 0x3d4   : > { %2289 = vrcp.f32 %v1408_v48  ;;  %v2276_v48 = vld [vmem:[#allocation12] sm:$0xff]  }
 0x3d7   : > { %v1411_v50 = vpop.xlane.xlu0 %1410 }
 0x3d8   : > { %2291 = vrcp.f32 %v1411_v50 }
 0x3d9   : > { %v2286_v51 = vpop.eup %2285 }
 0x3da   : > { %v1416_v52 = vmul.f32 %v2286_v51, %v2900_v42 }
 0x3db   : > { %v2288_v53 = vpop.eup %2287 }
 0x3dc   : > { %v1420_v55 = vpack.c.bf16 %v1416_v52, %v1416_v52  ;;  %v1417_v56 = vmul.f32 %v2288_v53, %v2906_v47 }
 0x3de   : > { %2129 = vmatmul.mubr.msk.bf16.vlgmr.msra.gmra.mxu0 %vm1191_vm3, %v1420_v55  ;;  %v1421_v59 = vpack.c.bf16 %v1417_v56, %v1417_v56 }
 0x3df   : > { %2139 = vmatpush3.bf16.msra.mxu0 %v1525_v58  ;;  %2140 = vmatprep.mubr.msk.bf16.mxu0 %vm2531_vm0, %v2530_v0 }
 0x3e0   : > { %2135 = vmatmul.mubr.msk.bf16.vlgmr.msra.gmra.mxu1 %vm1191_vm3, %v1421_v59  ;;  %2150 = vmatprep.subr.bf16.mxu0 %v2530_v0 }
 0x3e1   : > { %v2290_v42 = vpop.eup %2289  ;;  %2145 = vmatpush3.bf16.msra.mxu1 %v1571_v60  ;;  %2146 = vmatprep.mubr.msk.bf16.mxu1 %vm2531_vm0, %v2530_v0 }
 0x3e2   : > { %v1418_v47 = vmul.f32 %v2290_v42, %v2916_v3 }
 0x3e4   : > { %v1422_v61 = vpack.c.bf16 %v1418_v47, %v1418_v47 }
 0x3e5   : > { %v2292_v62 = vpop.eup %2291 }
 0x3e6   : > { %2141 = vmatmul.mubr.msk.bf16.vlgmr.msra.gmra.mxu0 %vm1191_vm3, %v1422_v61  ;;  %v1419_v63 = vmul.f32 %v2292_v62, %v2922_v20 }
 0x3e7   : > { %2154 = vmatprep.mubr.msk.bf16.mxu0 %vm2531_vm0, %v2530_v0  ;;  %2151 = vmatpush3.bf16.msra.mxu0 %v2275_v36 }
 0x3e8   : > { %v1423_v1 = vpack.c.bf16 %v1419_v63, %v1419_v63  ;;  %2152 = vmatprep.subr.bf16.mxu0 %v2530_v0 }
 0x3ea   : > { %2147 = vmatmul.mubr.msk.bf16.vlgmr.msra.gmra.mxu1 %vm1191_vm3, %v1423_v1  ;;  %v1771_v1 = vld [vmem:[%s3040_s8] sm:$0x1] }
 0x3eb   : > { %2153 = vmatpush3.bf16.msra.mxu0 %v2276_v48 }
 0x49e   : > { %v1469_v2 = vpop.f32.mrf.mxu0 }
 0x4a0   : > { %v2130_v4 = vpop.f32.mrf.mxu0  ;;  %v1515_v5 = vpop.f32.mrf.mxu1 }
 0x4a2   : > { %v1472_v7 = vpop.f32.mrf.mxu0  ;;  %v2136_v8 = vpop.f32.mrf.mxu1 }
 0x4a4   : > { %v2131_v9 = vpop.f32.mrf.mxu0  ;;  %v1518_v10 = vpop.f32.mrf.mxu1 }
 0x4a6   : > { %v2137_v3 = vpop.f32.mrf.mxu1  ;;  %v1561_v11 = vpop.f32.mrf.mxu0 }
 0x4a7   : > { %v1613_v14 = vcombine.low %v1469_v2, %v1561_v11  ;;  %v1614_v17 = vcombine.high %v1469_v2, %v1561_v11  ;;  %v1772_v2 = vunpack.c.l.bf16 %v1771_v1 }
 0x4a8   : > { %v2142_v13 = vpop.f32.mrf.mxu0 }
 0x4a9   : > { %v1621_v23 = vrot.slane %v1613_v14, %v2804_v35  ;;  %v1628_v24 = vrot.slane %v1614_v17, %v2804_v35  ;;  %v1776_v4 = vrot.slane %v1772_v2, %v2795_v12 }
 0x4aa   : > { %v1564_v15 = vpop.f32.mrf.mxu0  ;;  %v1607_v18 = vpop.f32.mrf.mxu1 }
 0x4ab   : > { %v1629_v16 = vcombine.low %v1515_v5, %v1607_v18  ;;  %v1630_v19 = vcombine.high %v1515_v5, %v1607_v18  ;;  %v1832_v5 = vunpack.c.l.bf16 %v2778_v6 }
 0x4ac   : > { %v2143_v20 = vpop.f32.mrf.mxu0  ;;  %v2148_v22 = vpop.f32.mrf.mxu1 }
 0x4ad   : > { %v1637_v25 = vrot.slane %v1629_v16, %v2804_v35  ;;  %v1644_v26 = vrot.slane %v1630_v19, %v2804_v35  ;;  %v1834_v22 = vld [vmem:[%s3041_s9] sm:$0x1] }
 0x4ae   : > { %v1610_v27 = vpop.f32.mrf.mxu1 }
 0x4af   : > { %v1645_v28 = vcombine.low %v1621_v23, %v1637_v25  ;;  %v1646_v29 = vcombine.high %v1621_v23, %v1637_v25  ;;  %v1661_v21 = vcombine.low %v1628_v24, %v1644_v26  ;;  %v1662_v30 = vcombine.high %v1628_v24, %v1644_v26  ;;  %v1835_v23 = vld [vmem:[%s3042_s10] sm:$0x1] }
 0x4b0   : > { %v2149_v44 = vpop.f32.mrf.mxu1  ;;  %v1850_v24 = vunpack.c.l.bf16 %v1834_v22  ;;  %v1856_v25 = vunpack.c.l.bf16 %v1835_v23 }
 0x4b1   : > { %v1653_v37 = vrot.slane %v1645_v28, %v2810_v38  ;;  %v1660_v31 = vrot.slane %v1646_v29, %v2810_v38  ;;  %v1669_v32 = vrot.slane %v1661_v21, %v2810_v38  ;;  %v1676_v33 = vrot.slane %v1662_v30, %v2810_v38 }
 0x4b2   : > { %v1854_v26 = vrot.slane %v1850_v24, %v2795_v12  ;;  %v1860_v29 = vrot.slane %v1856_v25, %v2795_v12 }
 0x4b3   : > { %v1681_v34 = vcombine.low %v1653_v37, %v1660_v31  ;;  %v2052_v39 = vcombine.high %v1653_v37, %v1660_v31  ;;  %v1697_v40 = vcombine.low %v1669_v32, %v1676_v33  ;;  %v2053_v49 = vcombine.high %v1669_v32, %v1676_v33 }
 0x4b5   : > { %v1688_v41 = vrot.slane %v1681_v34, %v2804_v35  ;;  %v1696_v43 = vrot.slane %v2052_v39, %v2804_v35  ;;  %v1704_v45 = vrot.slane %v1697_v40, %v2804_v35  ;;  %v1712_v46 = vrot.slane %v2053_v49, %v2804_v35 }
 0x4b7   : > { %v1714_v50 = vcombine.high %v1688_v41, %v1696_v43  ;;  %v1730_v51 = vcombine.high %v1704_v45, %v1712_v46  ;;  %v1713_v52 = vcombine.low %v1688_v41, %v1696_v43  ;;  %v1729_v53 = vcombine.low %v1704_v45, %v1712_v46 }
 0x4b9   : > { %v1728_v54 = vrot.slane %v1714_v50, %v2810_v38  ;;  %v1744_v55 = vrot.slane %v1730_v51, %v2810_v38  ;;  %v1721_v0 = vrot.slane %v1713_v52, %v2810_v38  ;;  %v1737_v56 = vrot.slane %v1729_v53, %v2810_v38 }
 0x4bb   : > { %v1747_v57 = vcombine.low %v1728_v54, %v1744_v55  ;;  %v1746_v58 = vcombine.high %v1721_v0, %v1737_v56  ;;  %v1745_v59 = vcombine.low %v1721_v0, %v1737_v56  ;;  %v1748_v35 = vcombine.high %v1728_v54, %v1744_v55 }
 0x4bd   : > { %1754 = vrot.lane.b32.xlu0 %v1747_v57, %s2540_s12  ;;  %1750 = vrot.lane.b32.xlu1 %v1746_v58, %s2541_s7  ;;  %s1878_s12 = scalar_lea.hbm %s3078_s15, %s2058_s14  ;;  %s1866_s7 = scalar_lea.sflag [#allocation6], %s2745_s5 }
 0x4c1   : > { %1758 = vrot.lane.b32.xlu1 %v1748_v35, %s2542_s27  ;;  %s2429_s27 = scalar_lea.vmem %s1881_s3, 64 }
 0x4c2   : > { %p2430_p3 = scmp.ne.s32.totalorder %s1881_s3, %s2429_s27  ;;  %p2437_p13 = scmp.lt.s32.totalorder %s2435_s20, %s2429_s27 }
 0x4c4   : > { %p2431_p10 = pnand %p2430_p3, %p2700_p5  ;;  %p2438_p2 = por %p2437_p13, %p2436_p9 }
 0x4c6   : > { %p2432_p11 = pneg %p2431_p10 }
 0x4c8   : > { %p2439_p4 = pnand %p2438_p2, %p2432_p11 }
 0x52f   : > { %v1751_v60 = vpop.permute.xlu1 %1750  ;;  %v1755_v42 = vpop.permute.xlu0 %1754 }
 0x530   : > { %v1761_v47 = vsel %vm1191_vm3, %v1745_v59, %v1751_v60 }
 0x531   : > { %v1763_v62 = vsel %vm1762_vm6, %v1761_v47, %v1755_v42 }
 0x533   : > { %v1759_v61 = vpop.permute.xlu1 %1758 }
 0x534   : > { %v1765_v63 = vsel %vm1764_vm7, %v1763_v62, %v1759_v61 }
 0x535   : > { %v1766_v38 = vpack.c.bf16 %v1765_v63, %v1765_v63 }
 0x537   : > { %2155 = vmatmul.mubr.msk.bf16.vlgmr.msra.gmra.mxu0 %vm541_vm1, %v1766_v38 }
 0x5f7   : > { %v1826_v7 = vpop.f32.mrf.mxu0 }
 0x5f8   : > { %v1827_v8 = vadd.f32 %v1826_v7, %v1776_v4 }
 0x5f9   : > { %v2156_v9 = vpop.f32.mrf.mxu0 }
 0x5fa   : > { %v1833_v10 = vadd.f32 %v1832_v5, %v1827_v8 }
 0x5fb   : > { %v1829_v3 = vpop.f32.mrf.mxu0 }
 0x5fc   : > { %v1836_v11 = vsel %vm541_vm1, %v1833_v10, 0.0 }
 0x5fd   : > { %1837 = vadd.xlane.f32.xlu1 %v1836_v11  ;;  %v2157_v13 = vpop.f32.mrf.mxu0 }
 0x686   : > { %v1838_v14 = vpop.xlane.xlu1 %1837 }
 0x687   : > { %v1840_v17 = vmul.f32 0.03125, %v1838_v14 }
 0x689   : > { %v1841_v15 = vsub.f32 %v1833_v10, %v1840_v17 }
 0x68b   : > { %v1842_v18 = vmul.f32 %v1841_v15, %v1841_v15 }
 0x68d   : > { %v1843_v16 = vsel %vm541_vm1, %v1842_v18, 0.0 }
 0x68e   : > { %1844 = vadd.xlane.f32.xlu0 %v1843_v16 }
 0x717   : > { %v1845_v19 = vpop.xlane.xlu0 %1844 }
 0x718   : > { %v1846_v6 = vmul.f32 0.03125, %v1845_v19 }
 0x71a   : > { %v1847_v20 = vadd.f32 1e-05, %v1846_v6 }
 0x71c   : > { %2293 = vrsqrt.f32 %v1847_v20 }
 0x729   : > { %v2294_v27 = vpop.eup %2293 }
 0x72a   : > { %v1849_v28 = vmul.f32 %v2294_v27, %v1841_v15 }
 0x72c   : > { %v1855_v21 = vmul.f32 %v1854_v26, %v1849_v28 }
 0x72e   : > { %v1861_v30 = vadd.f32 %v1860_v29, %v1855_v21 }
 0x730   : > { %v1862_v44 = vpack.c.bf16 %v1861_v30, %v1861_v30 }
 0x732   : > { %1864 = vst.msk [vmem:[%s509_s24] sm:$0xf] %vm1863_vm8, %v1862_v44 }
 0x733   : > { %2442 = shalt.err (!%p2439_p4)
}
 0x734   : > { %s2443_s13 = scalar_lea.hbm %s1878_s12, 64  ;;  %s2447_s17 = scalar_lea.hbm %s3078_s15, 128 }
 0x735   : > { %p2444_p1 = scmp.ne.s32.totalorder %s1878_s12, %s2443_s13  ;;  %p2448_p6 = scmp.lt.s32.totalorder %s1878_s12, %s3078_s15 }
 0x736   : > { %p2449_p12 = scmp.lt.s32.totalorder %s2447_s17, %s2443_s13 }
 0x737   : > { %p2445_p8 = pnand %p2444_p1, %p2700_p5 }
 0x738   : > { %p2450_p0 = por %p2449_p12, %p2448_p6 }
 0x739   : > { %p2446_p7 = pneg %p2445_p8 }
 0x73b   : > { %p2451_p3 = pnand %p2450_p0, %p2446_p7 }
 0x73d   : > { %2454 = shalt.err (!%p2451_p3)
}
 0x73e   : > { %2174 = dma.vmem_to_hbm [thread:$0]  (%p2700_p5), %s1881_s3, 64, %s1878_s12, %s1866_s7  }
 0x73f PF: > { %s3079_s14 = sld [smem:[#allocation19_spill]]  ;;  %p3082_p11 = scmp.ge.s32.totalorder %s2521_s22, 2 }
 0x740   : > { %s3080_s24 = sld [smem:[#allocation20_spill]] }
 0x745   : > { %s1892_s26 = sand.u32 1, %s3079_s14  }
 0x746   : > { %p3081_p10 = scmp.ne.s32.totalorder %s3080_s24, 0  ;;  %s1893_s0 = scalar_lea.sflag [#allocation6], %s1892_s26 }
 0x748   : > { %p2194_p9 = pnand %p3082_p11, %p3081_p10 }
 0x74a   : > { %p2195_p13 = pneg %p2194_p9 }
 0x74c   : > { %2496 = dma.done.wait (%p2195_p13), %s1893_s0, 64  }
 0x74d   : > { %2498 = vsyncadd (%p2195_p13), %s1893_s0, 4294967232  ;;  %s31_s22 = sadd.s32 1, %s2521_s22   ;;  %s3083_s30 = sld [smem:[#allocation22_spill]] }
 0x74e   : > { %p28_p2 = scmp.ge.s32.totalorder %s31_s22, 4   ;;  %s3084_s17 = smov %s2505_s18 }
 0x74f   : > { %s3085_s18 = smov %s2509_s19  ;;  %s3086_s19 = smov %s2712_s28 }
 0x750   : > { %s3087_s20 = smov %s2517_s21  ;;  %30 = sbr.rel (!%p28_p2) target bundleno = 15 (0xf), region = 141 }
 0x753   : > { %s3088_s21 = smov %s3083_s30 }
 0x755   :  { %1898 = vsyncpa [#allocation5], 1 }
 0x756   :  { %1900 = vsyncpa [#allocation5 + $0x1], 1 }
 0x757   :  { %1901 = vsyncpa [#allocation8], 1 }
 0x758   :  { %1903 = vsyncpa [#allocation8 + $0x1], 1 }
 0x759   :  { %1904 = vsyncpa [#allocation11], 1 }
 0x75a   :  { %1905 = vsyncpa [#allocation6], 1 }
 0x75b   :  { %1907 = vsyncpa [#allocation6 + $0x1], 1 }

</bundles_post_ra>
